<compile_context>
chip_gen: v5e
topology: v5e:2x2
jax: 0.10.0
libtpu: 0.0.40
codegen_flags: <defaults>
</compile_context>

<pallas_src>
import jax
import jax.numpy as jnp
from jax.experimental import pallas as pl

HIDDEN = 32      # hidden_size
VOCAB = 64       # output_size
HP = 128         # hidden padded to TPU lane width
VP = 128         # vocab padded to TPU lane width
NEG = -1e30      # bias value for padded vocab lanes (masked out of log-softmax)


def decoder_seq_kernel(tok_ref,      # (T, 1)    int32 token ids
                       emb_ref,      # (VP, HP)  relu(embedding) table, zero-padded
                       h0_ref,       # (1, HP)   initial hidden (zero-padded)
                       w_ih_ref,     # (HP, 3HP) fused, pre-transposed input gate weights
                       w_hh_ref,     # (HP, 3HP) fused, pre-transposed hidden gate weights
                       b_gi_ref,     # (1, 3HP)  b_ih (+ b_hh folded for r,z gates)
                       b_hn_ref,     # (1, HP)   b_hh of the n gate (stays inside r*(...))
                       w_out_ref,    # (HP, VP)  pre-transposed output projection
                       b_out_ref,    # (1, VP)   output bias, NEG on padded vocab lanes
                       logp_ref,     # (T, VP)   OUT: log-probs
                       hout_ref):    # (1, HP)   OUT: final hidden
    T = logp_ref.shape[0]

    # ---- time-independent prologue (batched over all T steps) -----------------
    tok = tok_ref[...]                                               # (T, 1) int32
    vocab_iota = jax.lax.broadcasted_iota(jnp.int32, (T, VP), 1)
    onehot = (vocab_iota == tok).astype(jnp.float32)                 # (T, VP)
    # embedding gather (ReLU already folded into the table) as a single MXU matmul
    x = jnp.dot(onehot, emb_ref[...], preferred_element_type=jnp.float32)        # (T, HP)
    # input-side gate pre-activations do not depend on h -> hoist out of the loop
    gi_all = (jnp.dot(x, w_ih_ref[...], preferred_element_type=jnp.float32)
              + b_gi_ref[...])                                       # (T, 3HP)

    w_hh = w_hh_ref[...]
    b_hn = b_hn_ref[...]

    # ---- serial GRU recurrence: only the h-dependent work stays in the loop ---
    h = h0_ref[...]                                                  # (1, HP)
    h_rows = []
    for t in range(T):                                               # small static T: fully unrolled
        gi = gi_all[t:t + 1, :]                                      # (1, 3HP) static row slice
        gh = jnp.dot(h, w_hh, preferred_element_type=jnp.float32)    # (1, 3HP)
        r = jax.nn.sigmoid(gi[:, :HP] + gh[:, :HP])
        z = jax.nn.sigmoid(gi[:, HP:2 * HP] + gh[:, HP:2 * HP])
        n = jnp.tanh(gi[:, 2 * HP:] + r * (gh[:, 2 * HP:] + b_hn))
        h = (1.0 - z) * n + z * h                                    # PyTorch GRU update
        h_rows.append(h)
    hmat = jnp.concatenate(h_rows, axis=0)                           # (T, HP)

    # ---- batched epilogue: output projection + row-wise log-softmax -----------
    logits = (jnp.dot(hmat, w_out_ref[...], preferred_element_type=jnp.float32)
              + b_out_ref[...])                                      # (T, VP)
    m = jnp.max(logits, axis=-1, keepdims=True)
    lse = jnp.log(jnp.sum(jnp.exp(logits - m), axis=-1, keepdims=True)) + m
    logp_ref[...] = logits - lse                                     # one lane-dense (T, VP) store
    hout_ref[...] = h


def make_params(key, hidden=HIDDEN, vocab=VOCAB):
    ks = jax.random.split(key, 8)
    bound = 1.0 / jnp.sqrt(hidden)
    u = lambda k, shape: jax.random.uniform(k, shape, jnp.float32, -bound, bound)
    return dict(
        embedding=jax.random.normal(ks[0], (vocab, hidden), jnp.float32),
        w_ih=u(ks[1], (3, hidden, hidden)),   # gate order [r, z, n], (out, in) layout
        w_hh=u(ks[2], (3, hidden, hidden)),
        b_ih=u(ks[3], (3, 1, hidden)),
        b_hh=u(ks[4], (3, 1, hidden)),
        w_out=u(ks[5], (vocab, hidden)),
        b_out=u(ks[6], (1, vocab)),
    )


def pack_params(params):
    """One-time repack: ReLU the static table, transpose, gate-concat, lane-pad to 128."""
    H, V = HIDDEN, VOCAB
    # F.relu(embedding(x)) == relu(table)[x] -> fold the ReLU into the table once.
    emb = jnp.zeros((VP, HP), jnp.float32).at[:V, :H].set(
        jnp.maximum(params["embedding"], 0.0))
    w_ih_cat = jnp.zeros((HP, 3 * HP), jnp.float32)
    w_hh_cat = jnp.zeros((HP, 3 * HP), jnp.float32)
    for g in range(3):
        w_ih_cat = w_ih_cat.at[:H, g * HP:g * HP + H].set(params["w_ih"][g].T)
        w_hh_cat = w_hh_cat.at[:H, g * HP:g * HP + H].set(params["w_hh"][g].T)
    b_gi = jnp.zeros((1, 3 * HP), jnp.float32)
    b_gi = b_gi.at[:, 0 * HP:0 * HP + H].set(params["b_ih"][0] + params["b_hh"][0])  # r
    b_gi = b_gi.at[:, 1 * HP:1 * HP + H].set(params["b_ih"][1] + params["b_hh"][1])  # z
    b_gi = b_gi.at[:, 2 * HP:2 * HP + H].set(params["b_ih"][2])                      # n (input part)
    b_hn = jnp.zeros((1, HP), jnp.float32).at[:, :H].set(params["b_hh"][2])
    w_out = jnp.zeros((HP, VP), jnp.float32).at[:H, :V].set(params["w_out"].T)
    b_out = jnp.full((1, VP), NEG, jnp.float32).at[:, :V].set(params["b_out"])
    # TODO(synk): on v6e/v7x the fused weights could be bf16 (f32 accumulation kept);
    # left in f32 so the 1e-4 check below holds exactly on every TPU generation.
    return dict(emb=emb, w_ih_cat=w_ih_cat, w_hh_cat=w_hh_cat,
                b_gi=b_gi, b_hn=b_hn, w_out=w_out, b_out=b_out)


def decoder_rnn_decode(tokens, hidden, packed):
    """Run T decoder steps in ONE pallas_call (no grid; everything VMEM-resident).

    tokens: int32 (T,); hidden: (1,1,H). Returns (logp (T,V), hidden (1,1,H)).
    """
    T = int(tokens.shape[0])
    h0 = jnp.zeros((1, HP), jnp.float32).at[:, :HIDDEN].set(hidden.reshape(1, HIDDEN))
    tok2d = tokens.reshape(T, 1).astype(jnp.int32)

    logp_pad, h_pad = pl.pallas_call(
        decoder_seq_kernel,
        out_shape=(jax.ShapeDtypeStruct((T, VP), jnp.float32),
                   jax.ShapeDtypeStruct((1, HP), jnp.float32)),
    )(tok2d, packed["emb"], h0,
      packed["w_ih_cat"], packed["w_hh_cat"], packed["b_gi"], packed["b_hn"],
      packed["w_out"], packed["b_out"])

    logp = logp_pad[:, :VOCAB]
    h_final = h_pad[:, :HIDDEN].reshape(1, 1, HIDDEN)
    return logp, h_final


def decoder_rnn_forward(token, hidden, packed):
    """Single-step API matching the original torch forward(input, hidden)."""
    logp, h_new = decoder_rnn_decode(token.reshape(1), hidden, packed)
    return logp, h_new


def decoder_rnn_reference(tokens, hidden, params):
    """Pure-JAX reference: T sequential applications of the torch forward."""
    H = hidden.shape[-1]
    h = hidden.reshape(1, H)
    logps = []
    for t in range(tokens.shape[0]):
        x = jnp.maximum(params["embedding"][tokens[t]].reshape(1, H), 0.0)
        gi = [x @ params["w_ih"][i].T + params["b_ih"][i] for i in range(3)]
        gh = [h @ params["w_hh"][i].T + params["b_hh"][i] for i in range(3)]
        r = jax.nn.sigmoid(gi[0] + gh[0])
        z = jax.nn.sigmoid(gi[1] + gh[1])
        n = jnp.tanh(gi[2] + r * gh[2])
        h = (1.0 - z) * n + z * h
        logits = h @ params["w_out"].T + params["b_out"]
        logps.append(jax.nn.log_softmax(logits, axis=1))
    return jnp.concatenate(logps, axis=0), h.reshape(1, 1, H)


if __name__ == "__main__":
    key = jax.random.PRNGKey(0)
    params = make_params(key)
    packed = pack_params(params)

    T = 8
    tokens = jax.random.randint(jax.random.PRNGKey(1), (T,), 0, VOCAB, dtype=jnp.int32)
    hidden0 = jnp.zeros((1, 1, HIDDEN), jnp.float32)      # initHidden()

    # full multi-step decode: one pallas_call for all T tokens
    logp, h_final = decoder_rnn_decode(tokens, hidden0, packed)
    jax.block_until_ready((logp, h_final))

    ref_logp, ref_h = decoder_rnn_reference(tokens, hidden0, params)
    assert jnp.allclose(logp, ref_logp, atol=1e-4, rtol=1e-4), "logp mismatch"
    assert jnp.allclose(h_final, ref_h, atol=1e-4, rtol=1e-4), "hidden mismatch"

    # single-step API parity with the original torch forward(input, hidden)
    tok1 = jnp.array([[5]], dtype=jnp.int32)
    logp1, h1 = decoder_rnn_forward(tok1, hidden0, packed)
    jax.block_until_ready((logp1, h1))
    ref_logp1, ref_h1 = decoder_rnn_reference(tok1.reshape(1), hidden0, params)
    assert jnp.allclose(logp1, ref_logp1, atol=1e-4, rtol=1e-4), "single-step logp mismatch"
    assert jnp.allclose(h1, ref_h1, atol=1e-4, rtol=1e-4), "single-step hidden mismatch"

    print("KERNEL_OK")
</pallas_src>

<mosaic_0001>
module attributes {stable_mosaic.version = 11 : i64} {
  func.func @decoder_seq_kernel(%arg0: memref<8x1xi32, #tpu.memory_space<vmem>>, %arg1: memref<128x128xf32, #tpu.memory_space<vmem>>, %arg2: memref<1x128xf32, #tpu.memory_space<vmem>>, %arg3: memref<128x384xf32, #tpu.memory_space<vmem>>, %arg4: memref<128x384xf32, #tpu.memory_space<vmem>>, %arg5: memref<1x384xf32, #tpu.memory_space<vmem>>, %arg6: memref<1x128xf32, #tpu.memory_space<vmem>>, %arg7: memref<128x128xf32, #tpu.memory_space<vmem>>, %arg8: memref<1x128xf32, #tpu.memory_space<vmem>>, %arg9: memref<8x128xf32, #tpu.memory_space<vmem>>, %arg10: memref<1x128xf32, #tpu.memory_space<vmem>>) attributes {dimension_semantics = [], scalar_prefetch = 0 : i64, scratch_operands = 0 : i64, tpu.core_type = #tpu.core_type<tc>} {
    %c0 = arith.constant 0 : index
    %c0_0 = arith.constant 0 : index
    %0 = vector.load %arg0[%c0, %c0_0] : memref<8x1xi32, #tpu.memory_space<vmem>>, vector<8x1xi32>
    %1 = tpu.iota {dimensions = array<i32: 1>} : vector<8x128xi32>
    %2 = vector.broadcast %0 : vector<8x1xi32> to vector<8x128xi32>
    %3 = arith.cmpi eq, %1, %2 : vector<8x128xi32>
    %4 = arith.extui %3 : vector<8x128xi1> to vector<8x128xi32>
    %5 = arith.sitofp %4 : vector<8x128xi32> to vector<8x128xf32>
    %c0_1 = arith.constant 0 : index
    %c0_2 = arith.constant 0 : index
    %6 = vector.load %arg1[%c0_1, %c0_2] : memref<128x128xf32, #tpu.memory_space<vmem>>, vector<128x128xf32>
    %cst = arith.constant dense<0.000000e+00> : vector<8x128xf32>
    %7 = tpu.matmul %5, %6, %cst {dimension_numbers = #tpu.dot_dimension_numbers<[1], [0], [0], [1], [0, 0, 1, 1], [], []>} : vector<8x128xf32>, vector<128x128xf32>, vector<8x128xf32> -> vector<8x128xf32>
    %c0_3 = arith.constant 0 : index
    %c0_4 = arith.constant 0 : index
    %8 = vector.load %arg3[%c0_3, %c0_4] : memref<128x384xf32, #tpu.memory_space<vmem>>, vector<128x384xf32>
    %cst_5 = arith.constant dense<0.000000e+00> : vector<8x384xf32>
    %9 = tpu.matmul %7, %8, %cst_5 {dimension_numbers = #tpu.dot_dimension_numbers<[1], [0], [0], [1], [0, 0, 1, 1], [], []>} : vector<8x128xf32>, vector<128x384xf32>, vector<8x384xf32> -> vector<8x384xf32>
    %c0_6 = arith.constant 0 : index
    %c0_7 = arith.constant 0 : index
    %10 = vector.load %arg5[%c0_6, %c0_7] : memref<1x384xf32, #tpu.memory_space<vmem>>, vector<1x384xf32>
    %11 = vector.broadcast %10 : vector<1x384xf32> to vector<8x384xf32>
    %12 = arith.addf %9, %11 : vector<8x384xf32>
    %c0_8 = arith.constant 0 : index
    %c0_9 = arith.constant 0 : index
    %13 = vector.load %arg4[%c0_8, %c0_9] : memref<128x384xf32, #tpu.memory_space<vmem>>, vector<128x384xf32>
    %c0_10 = arith.constant 0 : index
    %c0_11 = arith.constant 0 : index
    %14 = vector.load %arg6[%c0_10, %c0_11] : memref<1x128xf32, #tpu.memory_space<vmem>>, vector<1x128xf32>
    %c0_12 = arith.constant 0 : index
    %c0_13 = arith.constant 0 : index
    %15 = vector.load %arg2[%c0_12, %c0_13] : memref<1x128xf32, #tpu.memory_space<vmem>>, vector<1x128xf32>
    %16 = vector.extract_strided_slice %12 {offsets = [0, 0], sizes = [1, 384], strides = [1, 1]} : vector<8x384xf32> to vector<1x384xf32>
    %cst_14 = arith.constant dense<0.000000e+00> : vector<1x384xf32>
    %17 = tpu.matmul %15, %13, %cst_14 {dimension_numbers = #tpu.dot_dimension_numbers<[1], [0], [0], [1], [0, 0, 1, 1], [], []>} : vector<1x128xf32>, vector<128x384xf32>, vector<1x384xf32> -> vector<1x384xf32>
    %18 = vector.extract_strided_slice %16 {offsets = [0, 0], sizes = [1, 128], strides = [1, 1]} : vector<1x384xf32> to vector<1x128xf32>
    %19 = vector.extract_strided_slice %17 {offsets = [0, 0], sizes = [1, 128], strides = [1, 1]} : vector<1x384xf32> to vector<1x128xf32>
    %20 = arith.addf %18, %19 : vector<1x128xf32>
    %21 = arith.negf %20 : vector<1x128xf32>
    %22 = math.exp %21 : vector<1x128xf32>
    %cst_15 = arith.constant 1.000000e+00 : f32
    %23 = vector.broadcast %cst_15 : f32 to vector<1x128xf32>
    %24 = arith.addf %23, %22 : vector<1x128xf32>
    %25 = arith.divf %23, %24 : vector<1x128xf32>
    %26 = vector.extract_strided_slice %16 {offsets = [0, 128], sizes = [1, 128], strides = [1, 1]} : vector<1x384xf32> to vector<1x128xf32>
    %27 = vector.extract_strided_slice %17 {offsets = [0, 128], sizes = [1, 128], strides = [1, 1]} : vector<1x384xf32> to vector<1x128xf32>
    %28 = arith.addf %26, %27 : vector<1x128xf32>
    %29 = arith.negf %28 : vector<1x128xf32>
    %30 = math.exp %29 : vector<1x128xf32>
    %cst_16 = arith.constant 1.000000e+00 : f32
    %31 = vector.broadcast %cst_16 : f32 to vector<1x128xf32>
    %32 = arith.addf %31, %30 : vector<1x128xf32>
    %33 = arith.divf %31, %32 : vector<1x128xf32>
    %34 = vector.extract_strided_slice %16 {offsets = [0, 256], sizes = [1, 128], strides = [1, 1]} : vector<1x384xf32> to vector<1x128xf32>
    %35 = vector.extract_strided_slice %17 {offsets = [0, 256], sizes = [1, 128], strides = [1, 1]} : vector<1x384xf32> to vector<1x128xf32>
    %36 = arith.addf %35, %14 : vector<1x128xf32>
    %37 = arith.mulf %25, %36 : vector<1x128xf32>
    %38 = arith.addf %34, %37 : vector<1x128xf32>
    %39 = math.tanh %38 : vector<1x128xf32>
    %cst_17 = arith.constant 1.000000e+00 : f32
    %40 = vector.broadcast %cst_17 : f32 to vector<1x128xf32>
    %41 = arith.subf %40, %33 : vector<1x128xf32>
    %42 = arith.mulf %41, %39 : vector<1x128xf32>
    %43 = arith.mulf %33, %15 : vector<1x128xf32>
    %44 = arith.addf %42, %43 : vector<1x128xf32>
    %45 = vector.extract_strided_slice %12 {offsets = [1, 0], sizes = [1, 384], strides = [1, 1]} : vector<8x384xf32> to vector<1x384xf32>
    %cst_18 = arith.constant dense<0.000000e+00> : vector<1x384xf32>
    %46 = tpu.matmul %44, %13, %cst_18 {dimension_numbers = #tpu.dot_dimension_numbers<[1], [0], [0], [1], [0, 0, 1, 1], [], []>} : vector<1x128xf32>, vector<128x384xf32>, vector<1x384xf32> -> vector<1x384xf32>
    %47 = vector.extract_strided_slice %45 {offsets = [0, 0], sizes = [1, 128], strides = [1, 1]} : vector<1x384xf32> to vector<1x128xf32>
    %48 = vector.extract_strided_slice %46 {offsets = [0, 0], sizes = [1, 128], strides = [1, 1]} : vector<1x384xf32> to vector<1x128xf32>
    %49 = arith.addf %47, %48 : vector<1x128xf32>
    %50 = arith.negf %49 : vector<1x128xf32>
    %51 = math.exp %50 : vector<1x128xf32>
    %cst_19 = arith.constant 1.000000e+00 : f32
    %52 = vector.broadcast %cst_19 : f32 to vector<1x128xf32>
    %53 = arith.addf %52, %51 : vector<1x128xf32>
    %54 = arith.divf %52, %53 : vector<1x128xf32>
    %55 = vector.extract_strided_slice %45 {offsets = [0, 128], sizes = [1, 128], strides = [1, 1]} : vector<1x384xf32> to vector<1x128xf32>
    %56 = vector.extract_strided_slice %46 {offsets = [0, 128], sizes = [1, 128], strides = [1, 1]} : vector<1x384xf32> to vector<1x128xf32>
    %57 = arith.addf %55, %56 : vector<1x128xf32>
    %58 = arith.negf %57 : vector<1x128xf32>
    %59 = math.exp %58 : vector<1x128xf32>
    %cst_20 = arith.constant 1.000000e+00 : f32
    %60 = vector.broadcast %cst_20 : f32 to vector<1x128xf32>
    %61 = arith.addf %60, %59 : vector<1x128xf32>
    %62 = arith.divf %60, %61 : vector<1x128xf32>
    %63 = vector.extract_strided_slice %45 {offsets = [0, 256], sizes = [1, 128], strides = [1, 1]} : vector<1x384xf32> to vector<1x128xf32>
    %64 = vector.extract_strided_slice %46 {offsets = [0, 256], sizes = [1, 128], strides = [1, 1]} : vector<1x384xf32> to vector<1x128xf32>
    %65 = arith.addf %64, %14 : vector<1x128xf32>
    %66 = arith.mulf %54, %65 : vector<1x128xf32>
    %67 = arith.addf %63, %66 : vector<1x128xf32>
    %68 = math.tanh %67 : vector<1x128xf32>
    %cst_21 = arith.constant 1.000000e+00 : f32
    %69 = vector.broadcast %cst_21 : f32 to vector<1x128xf32>
    %70 = arith.subf %69, %62 : vector<1x128xf32>
    %71 = arith.mulf %70, %68 : vector<1x128xf32>
    %72 = arith.mulf %62, %44 : vector<1x128xf32>
    %73 = arith.addf %71, %72 : vector<1x128xf32>
    %74 = vector.extract_strided_slice %12 {offsets = [2, 0], sizes = [1, 384], strides = [1, 1]} : vector<8x384xf32> to vector<1x384xf32>
    %cst_22 = arith.constant dense<0.000000e+00> : vector<1x384xf32>
    %75 = tpu.matmul %73, %13, %cst_22 {dimension_numbers = #tpu.dot_dimension_numbers<[1], [0], [0], [1], [0, 0, 1, 1], [], []>} : vector<1x128xf32>, vector<128x384xf32>, vector<1x384xf32> -> vector<1x384xf32>
    %76 = vector.extract_strided_slice %74 {offsets = [0, 0], sizes = [1, 128], strides = [1, 1]} : vector<1x384xf32> to vector<1x128xf32>
    %77 = vector.extract_strided_slice %75 {offsets = [0, 0], sizes = [1, 128], strides = [1, 1]} : vector<1x384xf32> to vector<1x128xf32>
    %78 = arith.addf %76, %77 : vector<1x128xf32>
    %79 = arith.negf %78 : vector<1x128xf32>
    %80 = math.exp %79 : vector<1x128xf32>
    %cst_23 = arith.constant 1.000000e+00 : f32
    %81 = vector.broadcast %cst_23 : f32 to vector<1x128xf32>
    %82 = arith.addf %81, %80 : vector<1x128xf32>
    %83 = arith.divf %81, %82 : vector<1x128xf32>
    %84 = vector.extract_strided_slice %74 {offsets = [0, 128], sizes = [1, 128], strides = [1, 1]} : vector<1x384xf32> to vector<1x128xf32>
    %85 = vector.extract_strided_slice %75 {offsets = [0, 128], sizes = [1, 128], strides = [1, 1]} : vector<1x384xf32> to vector<1x128xf32>
    %86 = arith.addf %84, %85 : vector<1x128xf32>
    %87 = arith.negf %86 : vector<1x128xf32>
    %88 = math.exp %87 : vector<1x128xf32>
    %cst_24 = arith.constant 1.000000e+00 : f32
    %89 = vector.broadcast %cst_24 : f32 to vector<1x128xf32>
    %90 = arith.addf %89, %88 : vector<1x128xf32>
    %91 = arith.divf %89, %90 : vector<1x128xf32>
    %92 = vector.extract_strided_slice %74 {offsets = [0, 256], sizes = [1, 128], strides = [1, 1]} : vector<1x384xf32> to vector<1x128xf32>
    %93 = vector.extract_strided_slice %75 {offsets = [0, 256], sizes = [1, 128], strides = [1, 1]} : vector<1x384xf32> to vector<1x128xf32>
    %94 = arith.addf %93, %14 : vector<1x128xf32>
    %95 = arith.mulf %83, %94 : vector<1x128xf32>
    %96 = arith.addf %92, %95 : vector<1x128xf32>
    %97 = math.tanh %96 : vector<1x128xf32>
    %cst_25 = arith.constant 1.000000e+00 : f32
    %98 = vector.broadcast %cst_25 : f32 to vector<1x128xf32>
    %99 = arith.subf %98, %91 : vector<1x128xf32>
    %100 = arith.mulf %99, %97 : vector<1x128xf32>
    %101 = arith.mulf %91, %73 : vector<1x128xf32>
    %102 = arith.addf %100, %101 : vector<1x128xf32>
    %103 = vector.extract_strided_slice %12 {offsets = [3, 0], sizes = [1, 384], strides = [1, 1]} : vector<8x384xf32> to vector<1x384xf32>
    %cst_26 = arith.constant dense<0.000000e+00> : vector<1x384xf32>
    %104 = tpu.matmul %102, %13, %cst_26 {dimension_numbers = #tpu.dot_dimension_numbers<[1], [0], [0], [1], [0, 0, 1, 1], [], []>} : vector<1x128xf32>, vector<128x384xf32>, vector<1x384xf32> -> vector<1x384xf32>
    %105 = vector.extract_strided_slice %103 {offsets = [0, 0], sizes = [1, 128], strides = [1, 1]} : vector<1x384xf32> to vector<1x128xf32>
    %106 = vector.extract_strided_slice %104 {offsets = [0, 0], sizes = [1, 128], strides = [1, 1]} : vector<1x384xf32> to vector<1x128xf32>
    %107 = arith.addf %105, %106 : vector<1x128xf32>
    %108 = arith.negf %107 : vector<1x128xf32>
    %109 = math.exp %108 : vector<1x128xf32>
    %cst_27 = arith.constant 1.000000e+00 : f32
    %110 = vector.broadcast %cst_27 : f32 to vector<1x128xf32>
    %111 = arith.addf %110, %109 : vector<1x128xf32>
    %112 = arith.divf %110, %111 : vector<1x128xf32>
    %113 = vector.extract_strided_slice %103 {offsets = [0, 128], sizes = [1, 128], strides = [1, 1]} : vector<1x384xf32> to vector<1x128xf32>
    %114 = vector.extract_strided_slice %104 {offsets = [0, 128], sizes = [1, 128], strides = [1, 1]} : vector<1x384xf32> to vector<1x128xf32>
    %115 = arith.addf %113, %114 : vector<1x128xf32>
    %116 = arith.negf %115 : vector<1x128xf32>
    %117 = math.exp %116 : vector<1x128xf32>
    %cst_28 = arith.constant 1.000000e+00 : f32
    %118 = vector.broadcast %cst_28 : f32 to vector<1x128xf32>
    %119 = arith.addf %118, %117 : vector<1x128xf32>
    %120 = arith.divf %118, %119 : vector<1x128xf32>
    %121 = vector.extract_strided_slice %103 {offsets = [0, 256], sizes = [1, 128], strides = [1, 1]} : vector<1x384xf32> to vector<1x128xf32>
    %122 = vector.extract_strided_slice %104 {offsets = [0, 256], sizes = [1, 128], strides = [1, 1]} : vector<1x384xf32> to vector<1x128xf32>
    %123 = arith.addf %122, %14 : vector<1x128xf32>
    %124 = arith.mulf %112, %123 : vector<1x128xf32>
    %125 = arith.addf %121, %124 : vector<1x128xf32>
    %126 = math.tanh %125 : vector<1x128xf32>
    %cst_29 = arith.constant 1.000000e+00 : f32
    %127 = vector.broadcast %cst_29 : f32 to vector<1x128xf32>
    %128 = arith.subf %127, %120 : vector<1x128xf32>
    %129 = arith.mulf %128, %126 : vector<1x128xf32>
    %130 = arith.mulf %120, %102 : vector<1x128xf32>
    %131 = arith.addf %129, %130 : vector<1x128xf32>
    %132 = vector.extract_strided_slice %12 {offsets = [4, 0], sizes = [1, 384], strides = [1, 1]} : vector<8x384xf32> to vector<1x384xf32>
    %cst_30 = arith.constant dense<0.000000e+00> : vector<1x384xf32>
    %133 = tpu.matmul %131, %13, %cst_30 {dimension_numbers = #tpu.dot_dimension_numbers<[1], [0], [0], [1], [0, 0, 1, 1], [], []>} : vector<1x128xf32>, vector<128x384xf32>, vector<1x384xf32> -> vector<1x384xf32>
    %134 = vector.extract_strided_slice %132 {offsets = [0, 0], sizes = [1, 128], strides = [1, 1]} : vector<1x384xf32> to vector<1x128xf32>
    %135 = vector.extract_strided_slice %133 {offsets = [0, 0], sizes = [1, 128], strides = [1, 1]} : vector<1x384xf32> to vector<1x128xf32>
    %136 = arith.addf %134, %135 : vector<1x128xf32>
    %137 = arith.negf %136 : vector<1x128xf32>
    %138 = math.exp %137 : vector<1x128xf32>
    %cst_31 = arith.constant 1.000000e+00 : f32
    %139 = vector.broadcast %cst_31 : f32 to vector<1x128xf32>
    %140 = arith.addf %139, %138 : vector<1x128xf32>
    %141 = arith.divf %139, %140 : vector<1x128xf32>
    %142 = vector.extract_strided_slice %132 {offsets = [0, 128], sizes = [1, 128], strides = [1, 1]} : vector<1x384xf32> to vector<1x128xf32>
    %143 = vector.extract_strided_slice %133 {offsets = [0, 128], sizes = [1, 128], strides = [1, 1]} : vector<1x384xf32> to vector<1x128xf32>
    %144 = arith.addf %142, %143 : vector<1x128xf32>
    %145 = arith.negf %144 : vector<1x128xf32>
    %146 = math.exp %145 : vector<1x128xf32>
    %cst_32 = arith.constant 1.000000e+00 : f32
    %147 = vector.broadcast %cst_32 : f32 to vector<1x128xf32>
    %148 = arith.addf %147, %146 : vector<1x128xf32>
    %149 = arith.divf %147, %148 : vector<1x128xf32>
    %150 = vector.extract_strided_slice %132 {offsets = [0, 256], sizes = [1, 128], strides = [1, 1]} : vector<1x384xf32> to vector<1x128xf32>
    %151 = vector.extract_strided_slice %133 {offsets = [0, 256], sizes = [1, 128], strides = [1, 1]} : vector<1x384xf32> to vector<1x128xf32>
    %152 = arith.addf %151, %14 : vector<1x128xf32>
    %153 = arith.mulf %141, %152 : vector<1x128xf32>
    %154 = arith.addf %150, %153 : vector<1x128xf32>
    %155 = math.tanh %154 : vector<1x128xf32>
    %cst_33 = arith.constant 1.000000e+00 : f32
    %156 = vector.broadcast %cst_33 : f32 to vector<1x128xf32>
    %157 = arith.subf %156, %149 : vector<1x128xf32>
    %158 = arith.mulf %157, %155 : vector<1x128xf32>
    %159 = arith.mulf %149, %131 : vector<1x128xf32>
    %160 = arith.addf %158, %159 : vector<1x128xf32>
    %161 = vector.extract_strided_slice %12 {offsets = [5, 0], sizes = [1, 384], strides = [1, 1]} : vector<8x384xf32> to vector<1x384xf32>
    %cst_34 = arith.constant dense<0.000000e+00> : vector<1x384xf32>
    %162 = tpu.matmul %160, %13, %cst_34 {dimension_numbers = #tpu.dot_dimension_numbers<[1], [0], [0], [1], [0, 0, 1, 1], [], []>} : vector<1x128xf32>, vector<128x384xf32>, vector<1x384xf32> -> vector<1x384xf32>
    %163 = vector.extract_strided_slice %161 {offsets = [0, 0], sizes = [1, 128], strides = [1, 1]} : vector<1x384xf32> to vector<1x128xf32>
    %164 = vector.extract_strided_slice %162 {offsets = [0, 0], sizes = [1, 128], strides = [1, 1]} : vector<1x384xf32> to vector<1x128xf32>
    %165 = arith.addf %163, %164 : vector<1x128xf32>
    %166 = arith.negf %165 : vector<1x128xf32>
    %167 = math.exp %166 : vector<1x128xf32>
    %cst_35 = arith.constant 1.000000e+00 : f32
    %168 = vector.broadcast %cst_35 : f32 to vector<1x128xf32>
    %169 = arith.addf %168, %167 : vector<1x128xf32>
    %170 = arith.divf %168, %169 : vector<1x128xf32>
    %171 = vector.extract_strided_slice %161 {offsets = [0, 128], sizes = [1, 128], strides = [1, 1]} : vector<1x384xf32> to vector<1x128xf32>
    %172 = vector.extract_strided_slice %162 {offsets = [0, 128], sizes = [1, 128], strides = [1, 1]} : vector<1x384xf32> to vector<1x128xf32>
    %173 = arith.addf %171, %172 : vector<1x128xf32>
    %174 = arith.negf %173 : vector<1x128xf32>
    %175 = math.exp %174 : vector<1x128xf32>
    %cst_36 = arith.constant 1.000000e+00 : f32
    %176 = vector.broadcast %cst_36 : f32 to vector<1x128xf32>
    %177 = arith.addf %176, %175 : vector<1x128xf32>
    %178 = arith.divf %176, %177 : vector<1x128xf32>
    %179 = vector.extract_strided_slice %161 {offsets = [0, 256], sizes = [1, 128], strides = [1, 1]} : vector<1x384xf32> to vector<1x128xf32>
    %180 = vector.extract_strided_slice %162 {offsets = [0, 256], sizes = [1, 128], strides = [1, 1]} : vector<1x384xf32> to vector<1x128xf32>
    %181 = arith.addf %180, %14 : vector<1x128xf32>
    %182 = arith.mulf %170, %181 : vector<1x128xf32>
    %183 = arith.addf %179, %182 : vector<1x128xf32>
    %184 = math.tanh %183 : vector<1x128xf32>
    %cst_37 = arith.constant 1.000000e+00 : f32
    %185 = vector.broadcast %cst_37 : f32 to vector<1x128xf32>
    %186 = arith.subf %185, %178 : vector<1x128xf32>
    %187 = arith.mulf %186, %184 : vector<1x128xf32>
    %188 = arith.mulf %178, %160 : vector<1x128xf32>
    %189 = arith.addf %187, %188 : vector<1x128xf32>
    %190 = vector.extract_strided_slice %12 {offsets = [6, 0], sizes = [1, 384], strides = [1, 1]} : vector<8x384xf32> to vector<1x384xf32>
    %cst_38 = arith.constant dense<0.000000e+00> : vector<1x384xf32>
    %191 = tpu.matmul %189, %13, %cst_38 {dimension_numbers = #tpu.dot_dimension_numbers<[1], [0], [0], [1], [0, 0, 1, 1], [], []>} : vector<1x128xf32>, vector<128x384xf32>, vector<1x384xf32> -> vector<1x384xf32>
    %192 = vector.extract_strided_slice %190 {offsets = [0, 0], sizes = [1, 128], strides = [1, 1]} : vector<1x384xf32> to vector<1x128xf32>
    %193 = vector.extract_strided_slice %191 {offsets = [0, 0], sizes = [1, 128], strides = [1, 1]} : vector<1x384xf32> to vector<1x128xf32>
    %194 = arith.addf %192, %193 : vector<1x128xf32>
    %195 = arith.negf %194 : vector<1x128xf32>
    %196 = math.exp %195 : vector<1x128xf32>
    %cst_39 = arith.constant 1.000000e+00 : f32
    %197 = vector.broadcast %cst_39 : f32 to vector<1x128xf32>
    %198 = arith.addf %197, %196 : vector<1x128xf32>
    %199 = arith.divf %197, %198 : vector<1x128xf32>
    %200 = vector.extract_strided_slice %190 {offsets = [0, 128], sizes = [1, 128], strides = [1, 1]} : vector<1x384xf32> to vector<1x128xf32>
    %201 = vector.extract_strided_slice %191 {offsets = [0, 128], sizes = [1, 128], strides = [1, 1]} : vector<1x384xf32> to vector<1x128xf32>
    %202 = arith.addf %200, %201 : vector<1x128xf32>
    %203 = arith.negf %202 : vector<1x128xf32>
    %204 = math.exp %203 : vector<1x128xf32>
    %cst_40 = arith.constant 1.000000e+00 : f32
    %205 = vector.broadcast %cst_40 : f32 to vector<1x128xf32>
    %206 = arith.addf %205, %204 : vector<1x128xf32>
    %207 = arith.divf %205, %206 : vector<1x128xf32>
    %208 = vector.extract_strided_slice %190 {offsets = [0, 256], sizes = [1, 128], strides = [1, 1]} : vector<1x384xf32> to vector<1x128xf32>
    %209 = vector.extract_strided_slice %191 {offsets = [0, 256], sizes = [1, 128], strides = [1, 1]} : vector<1x384xf32> to vector<1x128xf32>
    %210 = arith.addf %209, %14 : vector<1x128xf32>
    %211 = arith.mulf %199, %210 : vector<1x128xf32>
    %212 = arith.addf %208, %211 : vector<1x128xf32>
    %213 = math.tanh %212 : vector<1x128xf32>
    %cst_41 = arith.constant 1.000000e+00 : f32
    %214 = vector.broadcast %cst_41 : f32 to vector<1x128xf32>
    %215 = arith.subf %214, %207 : vector<1x128xf32>
    %216 = arith.mulf %215, %213 : vector<1x128xf32>
    %217 = arith.mulf %207, %189 : vector<1x128xf32>
    %218 = arith.addf %216, %217 : vector<1x128xf32>
    %219 = vector.extract_strided_slice %12 {offsets = [7, 0], sizes = [1, 384], strides = [1, 1]} : vector<8x384xf32> to vector<1x384xf32>
    %cst_42 = arith.constant dense<0.000000e+00> : vector<1x384xf32>
    %220 = tpu.matmul %218, %13, %cst_42 {dimension_numbers = #tpu.dot_dimension_numbers<[1], [0], [0], [1], [0, 0, 1, 1], [], []>} : vector<1x128xf32>, vector<128x384xf32>, vector<1x384xf32> -> vector<1x384xf32>
    %221 = vector.extract_strided_slice %219 {offsets = [0, 0], sizes = [1, 128], strides = [1, 1]} : vector<1x384xf32> to vector<1x128xf32>
    %222 = vector.extract_strided_slice %220 {offsets = [0, 0], sizes = [1, 128], strides = [1, 1]} : vector<1x384xf32> to vector<1x128xf32>
    %223 = arith.addf %221, %222 : vector<1x128xf32>
    %224 = arith.negf %223 : vector<1x128xf32>
    %225 = math.exp %224 : vector<1x128xf32>
    %cst_43 = arith.constant 1.000000e+00 : f32
    %226 = vector.broadcast %cst_43 : f32 to vector<1x128xf32>
    %227 = arith.addf %226, %225 : vector<1x128xf32>
    %228 = arith.divf %226, %227 : vector<1x128xf32>
    %229 = vector.extract_strided_slice %219 {offsets = [0, 128], sizes = [1, 128], strides = [1, 1]} : vector<1x384xf32> to vector<1x128xf32>
    %230 = vector.extract_strided_slice %220 {offsets = [0, 128], sizes = [1, 128], strides = [1, 1]} : vector<1x384xf32> to vector<1x128xf32>
    %231 = arith.addf %229, %230 : vector<1x128xf32>
    %232 = arith.negf %231 : vector<1x128xf32>
    %233 = math.exp %232 : vector<1x128xf32>
    %cst_44 = arith.constant 1.000000e+00 : f32
    %234 = vector.broadcast %cst_44 : f32 to vector<1x128xf32>
    %235 = arith.addf %234, %233 : vector<1x128xf32>
    %236 = arith.divf %234, %235 : vector<1x128xf32>
    %237 = vector.extract_strided_slice %219 {offsets = [0, 256], sizes = [1, 128], strides = [1, 1]} : vector<1x384xf32> to vector<1x128xf32>
    %238 = vector.extract_strided_slice %220 {offsets = [0, 256], sizes = [1, 128], strides = [1, 1]} : vector<1x384xf32> to vector<1x128xf32>
    %239 = arith.addf %238, %14 : vector<1x128xf32>
    %240 = arith.mulf %228, %239 : vector<1x128xf32>
    %241 = arith.addf %237, %240 : vector<1x128xf32>
    %242 = math.tanh %241 : vector<1x128xf32>
    %cst_45 = arith.constant 1.000000e+00 : f32
    %243 = vector.broadcast %cst_45 : f32 to vector<1x128xf32>
    %244 = arith.subf %243, %236 : vector<1x128xf32>
    %245 = arith.mulf %244, %242 : vector<1x128xf32>
    %246 = arith.mulf %236, %218 : vector<1x128xf32>
    %247 = arith.addf %245, %246 : vector<1x128xf32>
    %248 = tpu.concatenate %44, %73, %102, %131, %160, %189, %218, %247 in 0 : vector<1x128xf32>, vector<1x128xf32>, vector<1x128xf32>, vector<1x128xf32>, vector<1x128xf32>, vector<1x128xf32>, vector<1x128xf32>, vector<1x128xf32> -> vector<8x128xf32>
    %c0_46 = arith.constant 0 : index
    %c0_47 = arith.constant 0 : index
    %249 = vector.load %arg7[%c0_46, %c0_47] : memref<128x128xf32, #tpu.memory_space<vmem>>, vector<128x128xf32>
    %cst_48 = arith.constant dense<0.000000e+00> : vector<8x128xf32>
    %250 = tpu.matmul %248, %249, %cst_48 {dimension_numbers = #tpu.dot_dimension_numbers<[1], [0], [0], [1], [0, 0, 1, 1], [], []>} : vector<8x128xf32>, vector<128x128xf32>, vector<8x128xf32> -> vector<8x128xf32>
    %c0_49 = arith.constant 0 : index
    %c0_50 = arith.constant 0 : index
    %251 = vector.load %arg8[%c0_49, %c0_50] : memref<1x128xf32, #tpu.memory_space<vmem>>, vector<1x128xf32>
    %252 = vector.broadcast %251 : vector<1x128xf32> to vector<8x128xf32>
    %253 = arith.addf %250, %252 : vector<8x128xf32>
    %cst_51 = arith.constant dense<0xFF800000> : vector<8xf32>
    %254 = vector.multi_reduction <maximumf>, %253, %cst_51 [1] : vector<8x128xf32> to vector<8xf32>
    %255 = vector.shape_cast %254 : vector<8xf32> to vector<8x1xf32>
    %256 = vector.broadcast %255 : vector<8x1xf32> to vector<8x128xf32>
    %257 = arith.subf %253, %256 : vector<8x128xf32>
    %258 = math.exp %257 : vector<8x128xf32>
    %cst_52 = arith.constant dense<0.000000e+00> : vector<8xf32>
    %259 = vector.multi_reduction <add>, %258, %cst_52 [1] : vector<8x128xf32> to vector<8xf32>
    %260 = vector.shape_cast %259 : vector<8xf32> to vector<8x1xf32>
    %261 = math.log %260 : vector<8x1xf32>
    %262 = arith.addf %261, %255 : vector<8x1xf32>
    %263 = vector.broadcast %262 : vector<8x1xf32> to vector<8x128xf32>
    %264 = arith.subf %253, %263 : vector<8x128xf32>
    %c0_53 = arith.constant 0 : index
    %c0_54 = arith.constant 0 : index
    %265 = vector.load %arg9[%c0_53, %c0_54] : memref<8x128xf32, #tpu.memory_space<vmem>>, vector<8x128xf32>
    tpu.vector_store %arg9[%c0_53, %c0_54], %264 {strides = array<i32>} : memref<8x128xf32, #tpu.memory_space<vmem>>, vector<8x128xf32>,
    %c0_55 = arith.constant 0 : index
    %c0_56 = arith.constant 0 : index
    %266 = vector.load %arg10[%c0_55, %c0_56] : memref<1x128xf32, #tpu.memory_space<vmem>>, vector<1x128xf32>
    tpu.vector_store %arg10[%c0_55, %c0_56], %247 {strides = array<i32>} : memref<1x128xf32, #tpu.memory_space<vmem>>, vector<1x128xf32>,
    return
  }
}

</mosaic_0001>

<bundles_post_ra>
// kernel: tpu_custom_call.1
= control target key start
LH: loop header
LB: loop body
LE: loop exit
PB: predicated region body
PF: predicated region fallthrough
CT: control target
= control target key end

     0   :  { %16 = vsyncpa [#allocation3], 0  ;;  %s2414_s0 = inlined_call_operand.vmem [shape: s32[8,1], index: 0, kind: input, shape index: {}]   ;;  %s2415_s1 = inlined_call_operand.hbm [shape: f32[128,128], index: 1, kind: input, shape index: {}]   ;;  %s2416_s2 = inlined_call_operand.vmem [shape: f32[1,128], index: 2, kind: input, shape index: {}]   ;;  %s2417_s3 = inlined_call_operand.hbm [shape: f32[128,384], index: 3, kind: input, shape index: {}]   ;;  %s2418_s4 = inlined_call_operand.hbm [shape: f32[128,384], index: 4, kind: input, shape index: {}]   ;;  %s2419_s5 = inlined_call_operand.vmem [shape: f32[1,384], index: 5, kind: input, shape index: {}]   ;;  %s2420_s6 = inlined_call_operand.vmem [shape: f32[1,128], index: 6, kind: input, shape index: {}]   ;;  %s2421_s7 = inlined_call_operand.hbm [shape: f32[128,128], index: 7, kind: input, shape index: {}]   ;;  %s2422_s8 = inlined_call_operand.vmem [shape: f32[1,128], index: 8, kind: input, shape index: {}]   ;;  %s2423_s9 = inlined_call_operand.hbm [shape: f32[8,128], index: 9, kind: output, shape index: {0}]   ;;  %s2424_s10 = inlined_call_operand.hbm [shape: f32[1,128], index: 10, kind: output, shape index: {1}]  }
   0x1   :  { %17 = vsyncpa [#allocation6], 0 }
   0x2   :  { %18 = vsyncpa [#allocation9], 0 }
   0x3   :  { %19 = vsyncpa [#allocation4], 0  ;;  %s42_s15 = sshll.u32 %s2417_s3, 4  ;;  %s43_s15 = int_to_ptr.hbm [resolvable:$true] %s42_s15 }
   0x4   :  { %20 = vsyncpa [#allocation12], 0  ;;  %s1691_s16 = smov [#allocation5]   ;;  %s27_s20 = sshll.u32 %s2415_s1, 4  ;;  %s28_s20 = int_to_ptr.hbm [resolvable:$true] %s27_s20 }
   0x5   :  { %s44_s17 = sshll.u32 %s1691_s16, 4  ;;  %s1692_s21 = smov 384   ;;  %s45_s17 = int_to_ptr.vmem [resolvable:$true] %s44_s17 }
   0x6   :  { %s1693_s22 = smov 24   ;;  %s1694_s23 = smov [#allocation2]  }
   0x7   :  { %50 = dma.hbm_to_vmem [thread:$0]  %s43_s15, 6144, %s45_s17, [#allocation6], %s1692_s21, %s1692_s21, %s1693_s22  }
   0x8   :  { %s29_s24 = sshll.u32 %s1694_s23, 4  ;;  %s1695_s25 = smov 128   ;;  %s30_s24 = int_to_ptr.vmem [resolvable:$true] %s29_s24 }
   0x9   :  { %s1696_s26 = smov 8   ;;  %s55_s28 = sshll.u32 %s2418_s4, 4  ;;  %s56_s28 = int_to_ptr.hbm [resolvable:$true] %s55_s28 }
   0xa   :  { %35 = dma.hbm_to_vmem [thread:$0]  %s28_s20, 2048, %s30_s24, [#allocation3], %s1695_s25, %s1695_s25, %s1696_s26  }
   0xb   :  { %s1697_s29 = smov [#allocation7]   ;;  %s72_s12 = sshll.u32 %s2421_s7, 4  ;;  %s73_s12 = int_to_ptr.hbm [resolvable:$true] %s72_s12 }
   0xc   :  { %s57_s30 = sshll.u32 %s1697_s29, 4  ;;  %s1698_s13 = smov [#allocation8]   ;;  %s58_s30 = int_to_ptr.vmem [resolvable:$true] %s57_s30 }
   0xd   :  { %63 = dma.hbm_to_vmem [thread:$0]  %s56_s28, 6144, %s58_s30, [#allocation6], %s1692_s21, %s1692_s21, %s1693_s22  }
   0xe   :  { %s74_s14 = sshll.u32 %s1698_s13, 4  ;;  %s75_s14 = int_to_ptr.vmem [resolvable:$true] %s74_s14 }
   0xf   :  { %80 = dma.hbm_to_vmem [thread:$0]  %s73_s12, 2048, %s75_s14, [#allocation9], %s1695_s25, %s1695_s25, %s1696_s26  }
  0x10   :  { %1681 = dma.done.wait [#allocation3], 2048  }
  0x11   :  { %1682 = vsyncadd [#allocation3], 4294965248 }
  0x12   :  { %1683 = dma.done.wait [#allocation6], 12288  }
  0x13   :  { %1684 = vsyncadd [#allocation6], 4294955008 }
  0x14   :  { %1685 = dma.done.wait [#allocation9], 2048  }
  0x15   :  { %1686 = vsyncadd [#allocation9], 4294965248  ;;  %v1699_v0 = vmov 0   ;;  %v99_v1 = vld [vmem:[%s2414_s0] sm:$0xff]  ;;  %v123_v2 = vld [vmem:[#allocation2 + $0x78] sm:$0xff]  ;;  %v100_v62 = vlaneseq  ;;  %s1701_s21 = smov [#allocation11]  }
  0x16   :  { %1402 = vset.pattern.permute.xlu0 %v1699_v0  ;;  %v122_v3 = vld [vmem:[#allocation2 + $0x70] sm:$0xff]  ;;  %124 = vmatpush.msra.mxu0 %v123_v2  ;;  %v121_v4 = vld [vmem:[#allocation2 + $0x68] sm:$0xff]  ;;  %v120_v5 = vld [vmem:[#allocation2 + $0x60] sm:$0xff]  ;;  %s1353_s22 = sshll.u32 %s1701_s21, 4  ;;  %s1355_s25 = sshll.u32 %s2424_s10, 4  ;;  %s1354_s22 = int_to_ptr.vmem [resolvable:$true] %s1353_s22  ;;  %s1356_s25 = int_to_ptr.hbm [resolvable:$true] %s1355_s25 }
  0x17   :  { %103 = vperm.xlu0 %1402, %v99_v1   ;;  %v119_v6 = vld [vmem:[#allocation2 + $0x58] sm:$0xff]  ;;  %v118_v7 = vld [vmem:[#allocation2 + $0x50] sm:$0xff]  ;;  %v117_v8 = vld [vmem:[#allocation2 + $0x48] sm:$0xff]  ;;  %s1344_s28 = sshll.u32 %s2423_s9, 4  ;;  %s1345_s28 = int_to_ptr.hbm [resolvable:$true] %s1344_s28 }
  0x18   :  { %125 = vmatpush.msra.mxu0 %v122_v3  ;;  %v116_v9 = vld [vmem:[#allocation2 + $0x40] sm:$0xff]  ;;  %v115_v10 = vld [vmem:[#allocation2 + $0x38] sm:$0xff]  ;;  %v114_v11 = vld [vmem:[#allocation2 + $0x30] sm:$0xff] }
  0x19   :  { %v113_v12 = vld [vmem:[#allocation2 + $0x28] sm:$0xff]  ;;  %v112_v13 = vld [vmem:[#allocation2 + $0x20] sm:$0xff]  ;;  %v111_v14 = vld [vmem:[#allocation2 + $0x18] sm:$0xff] }
  0x1a   :  { %126 = vmatpush.msra.mxu0 %v121_v4  ;;  %v110_v15 = vld [vmem:[#allocation2 + $0x10] sm:$0xff]  ;;  %v109_v16 = vld [vmem:[#allocation2 + $0x8] sm:$0xff]  ;;  %v108_v17 = vld [vmem:[#allocation2] sm:$0xff] }
  0x1b   :  { %v189_v18 = vld [vmem:[#allocation5 + $0x168] sm:$0xff]  ;;  %v186_v19 = vld [vmem:[#allocation5 + $0x150] sm:$0xff]  ;;  %v183_v20 = vld [vmem:[#allocation5 + $0x138] sm:$0xff] }
  0x1c   :  { %127 = vmatpush.msra.mxu0 %v120_v5  ;;  %200 = vmatpush.msra.mxu1 %v189_v18  ;;  %v190_v21 = vld [vmem:[#allocation5 + $0x170] sm:$0xff]  ;;  %v187_v22 = vld [vmem:[#allocation5 + $0x158] sm:$0xff]  ;;  %v180_v23 = vld [vmem:[#allocation5 + $0x120] sm:$0xff]  ;;  %v1700_v18 = vmov 1.0  }
  0x1d   :  { %220 = vmatpush.msra.mxu2 %v190_v21  ;;  %v184_v24 = vld [vmem:[#allocation5 + $0x140] sm:$0xff]  ;;  %v191_v25 = vld [vmem:[#allocation5 + $0x178] sm:$0xff]  ;;  %v177_v26 = vld [vmem:[#allocation5 + $0x108] sm:$0xff] }
  0x1e   :  { %128 = vmatpush.msra.mxu0 %v119_v6  ;;  %201 = vmatpush.msra.mxu1 %v186_v19  ;;  %v188_v27 = vld [vmem:[#allocation5 + $0x160] sm:$0xff]  ;;  %v1773_v28 = vld [vmem:[#allocation7 + $0x168] sm:$0xff]  ;;  %v174_v31 = vld [vmem:[#allocation5 + $0xf0] sm:$0xff] }
  0x1f   :  { %221 = vmatpush.msra.mxu2 %v187_v22  ;;  %240 = vmatpush.msra.mxu3 %v191_v25  ;;  %v181_v29 = vld [vmem:[#allocation5 + $0x128] sm:$0xff]  ;;  %v1776_v32 = vld [vmem:[#allocation7 + $0x150] sm:$0xff]  ;;  %v1779_v35 = vld [vmem:[#allocation7 + $0x138] sm:$0xff] }
  0x20   :  { %129 = vmatpush.msra.mxu0 %v118_v7  ;;  %202 = vmatpush.msra.mxu1 %v183_v20  ;;  %v185_v30 = vld [vmem:[#allocation5 + $0x148] sm:$0xff]  ;;  %v178_v33 = vld [vmem:[#allocation5 + $0x110] sm:$0xff]  ;;  %v171_v36 = vld [vmem:[#allocation5 + $0xd8] sm:$0xff]  ;;  %v101_v7 = vand.u32 127, %v100_v62 }
  0x21   :  { %222 = vmatpush.msra.mxu2 %v184_v24  ;;  %241 = vmatpush.msra.mxu3 %v188_v27  ;;  %v182_v34 = vld [vmem:[#allocation5 + $0x130] sm:$0xff]  ;;  %v1781_v37 = vld [vmem:[#allocation7 + $0x120] sm:$0xff]  ;;  %v175_v38 = vld [vmem:[#allocation5 + $0xf8] sm:$0xff] }
  0x22   :  { %130 = vmatpush.msra.mxu0 %v117_v8  ;;  %203 = vmatpush.msra.mxu1 %v180_v23  ;;  %v179_v39 = vld [vmem:[#allocation5 + $0x118] sm:$0xff]  ;;  %v168_v40 = vld [vmem:[#allocation5 + $0xc0] sm:$0xff]  ;;  %v1784_v41 = vld [vmem:[#allocation7 + $0x108] sm:$0xff] }
  0x23   :  { %223 = vmatpush.msra.mxu2 %v181_v29  ;;  %242 = vmatpush.msra.mxu3 %v185_v30  ;;  %v172_v42 = vld [vmem:[#allocation5 + $0xe0] sm:$0xff]  ;;  %v165_v44 = vld [vmem:[#allocation5 + $0xa8] sm:$0xff]  ;;  %v1787_v45 = vld [vmem:[#allocation7 + $0xf0] sm:$0xff] }
  0x24   :  { %131 = vmatpush.msra.mxu0 %v116_v9  ;;  %204 = vmatpush.msra.mxu1 %v177_v26  ;;  %v176_v43 = vld [vmem:[#allocation5 + $0x100] sm:$0xff]  ;;  %v169_v46 = vld [vmem:[#allocation5 + $0xc8] sm:$0xff]  ;;  %v162_v48 = vld [vmem:[#allocation5 + $0x90] sm:$0xff] }
  0x25   :  { %224 = vmatpush.msra.mxu2 %v178_v33  ;;  %243 = vmatpush.msra.mxu3 %v182_v34  ;;  %v173_v47 = vld [vmem:[#allocation5 + $0xe8] sm:$0xff]  ;;  %v1790_v49 = vld [vmem:[#allocation7 + $0xd8] sm:$0xff]  ;;  %v166_v50 = vld [vmem:[#allocation5 + $0xb0] sm:$0xff] }
  0x26   :  { %132 = vmatpush.msra.mxu0 %v115_v10  ;;  %205 = vmatpush.msra.mxu1 %v174_v31  ;;  %v170_v51 = vld [vmem:[#allocation5 + $0xd0] sm:$0xff]  ;;  %v159_v52 = vld [vmem:[#allocation5 + $0x78] sm:$0xff]  ;;  %v1793_v53 = vld [vmem:[#allocation7 + $0xc0] sm:$0xff] }
  0x27   :  { %225 = vmatpush.msra.mxu2 %v175_v38  ;;  %244 = vmatpush.msra.mxu3 %v179_v39  ;;  %v163_v54 = vld [vmem:[#allocation5 + $0x98] sm:$0xff]  ;;  %v156_v56 = vld [vmem:[#allocation5 + $0x60] sm:$0xff]  ;;  %v1796_v57 = vld [vmem:[#allocation7 + $0xa8] sm:$0xff] }
  0x28   :  { %133 = vmatpush.msra.mxu0 %v114_v11  ;;  %206 = vmatpush.msra.mxu1 %v171_v36  ;;  %v167_v55 = vld [vmem:[#allocation5 + $0xb8] sm:$0xff]  ;;  %v160_v58 = vld [vmem:[#allocation5 + $0x80] sm:$0xff]  ;;  %v153_v60 = vld [vmem:[#allocation5 + $0x48] sm:$0xff] }
  0x29   :  { %226 = vmatpush.msra.mxu2 %v172_v42  ;;  %245 = vmatpush.msra.mxu3 %v176_v43  ;;  %v164_v59 = vld [vmem:[#allocation5 + $0xa0] sm:$0xff]  ;;  %v1799_v61 = vld [vmem:[#allocation7 + $0x90] sm:$0xff]  ;;  %v157_v63 = vld [vmem:[#allocation5 + $0x68] sm:$0xff] }
  0x2a   :  { %134 = vmatpush.msra.mxu0 %v113_v12  ;;  %207 = vmatpush.msra.mxu1 %v168_v40  ;;  %v161_v0 = vld [vmem:[#allocation5 + $0x88] sm:$0xff]  ;;  %v150_v1 = vld [vmem:[#allocation5 + $0x30] sm:$0xff]  ;;  %v1802_v2 = vld [vmem:[#allocation7 + $0x78] sm:$0xff] }
  0x2b   :  { %227 = vmatpush.msra.mxu2 %v169_v46  ;;  %246 = vmatpush.msra.mxu3 %v173_v47  ;;  %v154_v3 = vld [vmem:[#allocation5 + $0x50] sm:$0xff]  ;;  %v147_v5 = vld [vmem:[#allocation5 + $0x18] sm:$0xff]  ;;  %v1805_v6 = vld [vmem:[#allocation7 + $0x60] sm:$0xff] }
  0x2c   :  { %135 = vmatpush.msra.mxu0 %v112_v13  ;;  %208 = vmatpush.msra.mxu1 %v165_v44  ;;  %v158_v4 = vld [vmem:[#allocation5 + $0x70] sm:$0xff]  ;;  %v151_v8 = vld [vmem:[#allocation5 + $0x38] sm:$0xff]  ;;  %v144_v10 = vld [vmem:[#allocation5] sm:$0xff] }
  0x2d   :  { %228 = vmatpush.msra.mxu2 %v166_v50  ;;  %247 = vmatpush.msra.mxu3 %v170_v51  ;;  %v155_v9 = vld [vmem:[#allocation5 + $0x58] sm:$0xff]  ;;  %v1808_v11 = vld [vmem:[#allocation7 + $0x48] sm:$0xff]  ;;  %v1810_v12 = vld [vmem:[#allocation7 + $0x170] sm:$0xff] }
  0x2e   :  { %136 = vmatpush.msra.mxu0 %v111_v14  ;;  %209 = vmatpush.msra.mxu1 %v162_v48  ;;  %v148_v14 = vld [vmem:[#allocation5 + $0x20] sm:$0xff]  ;;  %v145_v19 = vld [vmem:[#allocation5 + $0x8] sm:$0xff]  ;;  %v1821_v22 = vld [vmem:[#allocation7 + $0x178] sm:$0xff] }
  0x2f   :  { %229 = vmatpush.msra.mxu2 %v163_v54  ;;  %248 = vmatpush.msra.mxu3 %v167_v55  ;;  %v149_v20 = vld [vmem:[#allocation5 + $0x28] sm:$0xff]  ;;  %v1819_v21 = vld [vmem:[#allocation7 + $0x140] sm:$0xff]  ;;  %v1831_v25 = vld [vmem:[#allocation7 + $0x110] sm:$0xff] }
  0x30   :  { %137 = vmatpush.msra.mxu0 %v110_v15  ;;  %210 = vmatpush.msra.mxu1 %v159_v52  ;;  %v152_v15 = vld [vmem:[#allocation5 + $0x40] sm:$0xff]  ;;  %v1825_v23 = vld [vmem:[#allocation7 + $0x128] sm:$0xff]  ;;  %v1837_v27 = vld [vmem:[#allocation7 + $0xf8] sm:$0xff] }
  0x31   :  { %230 = vmatpush.msra.mxu2 %v160_v58  ;;  %249 = vmatpush.msra.mxu3 %v164_v59  ;;  %v1827_v24 = vld [vmem:[#allocation7 + $0x160] sm:$0xff]  ;;  %v1833_v26 = vld [vmem:[#allocation7 + $0x148] sm:$0xff]  ;;  %v1847_v31 = vld [vmem:[#allocation7 + $0xb0] sm:$0xff] }
  0x32   :  { %138 = vmatpush.msra.mxu0 %v109_v16  ;;  %211 = vmatpush.msra.mxu1 %v156_v56  ;;  %v1813_v16 = vld [vmem:[#allocation7 + $0x158] sm:$0xff]  ;;  %v1841_v29 = vld [vmem:[#allocation7 + $0xe0] sm:$0xff]  ;;  %v1844_v30 = vld [vmem:[#allocation7 + $0xc8] sm:$0xff] }
  0x33   :  { %231 = vmatpush.msra.mxu2 %v157_v63  ;;  %250 = vmatpush.msra.mxu3 %v161_v0  ;;  %v1850_v33 = vld [vmem:[#allocation7 + $0x98] sm:$0xff]  ;;  %v1853_v34 = vld [vmem:[#allocation7 + $0x80] sm:$0xff]  ;;  %v146_v36 = vld [vmem:[#allocation5 + $0x10] sm:$0xff] }
  0x34   :  { %139 = vmatpush.msra.mxu0 %v108_v17  ;;  %212 = vmatpush.msra.mxu1 %v153_v60  ;;  %v1816_v17 = vld [vmem:[#allocation7 + $0x30] sm:$0xff]  ;;  %v1857_v38 = vld [vmem:[#allocation7 + $0x18] sm:$0xff]  ;;  %v1859_v39 = vld [vmem:[#allocation7 + $0x68] sm:$0xff] }
  0x35   :  { %232 = vmatpush.msra.mxu2 %v154_v3  ;;  %251 = vmatpush.msra.mxu3 %v158_v4  ;;  %2449 = vst [vmem:[#allocation18_spill] sm:$0xff] %v1816_v17  ;;  %v1862_v40 = vld [vmem:[#allocation7 + $0x130] sm:$0xff]  ;;  %v1866_v42 = vld [vmem:[#allocation7] sm:$0xff]  ;;  %v1870_v44 = vld [vmem:[#allocation7 + $0x118] sm:$0xff] }
  0x36   :  { %310 = vmatpush.msrb.mxu0 %v1773_v28  ;;  %213 = vmatpush.msra.mxu1 %v150_v1  ;;  %2450 = vst [vmem:[#allocation19_spill] sm:$0xff] %v1857_v38  ;;  %v1868_v43 = vld [vmem:[#allocation7 + $0x50] sm:$0xff]  ;;  %v1878_v46 = vld [vmem:[%s2416_s2] sm:$0x1]  ;;  %v1880_v47 = vld [vmem:[#allocation7 + $0x38] sm:$0xff] }
  0x37   :  { %233 = vmatpush.msra.mxu2 %v151_v8  ;;  %252 = vmatpush.msra.mxu3 %v155_v9  ;;  %2451 = vst [vmem:[#allocation20_spill] sm:$0xff] %v1866_v42  ;;  %v1882_v48 = vld [vmem:[#allocation7 + $0x100] sm:$0xff]  ;;  %v1889_v51 = vld [vmem:[#allocation7 + $0xe8] sm:$0xff]  ;;  %v1897_v54 = vld [vmem:[#allocation7 + $0xd0] sm:$0xff] }
  0x38   :  { %311 = vmatpush.msrb.mxu0 %v1776_v32  ;;  %214 = vmatpush.msra.mxu1 %v147_v5  ;;  %2452 = vst [vmem:[#allocation21_spill] sm:$0xff] %v1880_v47  ;;  %v1886_v50 = vld [vmem:[#allocation7 + $0x20] sm:$0xff]  ;;  %v1893_v52 = vld [vmem:[#allocation7 + $0x8] sm:$0xff]  ;;  %v1903_v55 = vld [vmem:[#allocation7 + $0xb8] sm:$0xff] }
  0x39   :  { %234 = vmatpush.msra.mxu2 %v148_v14  ;;  %253 = vmatpush.msra.mxu3 %v152_v15  ;;  %2453 = vst [vmem:[#allocation22_spill] sm:$0xff] %v1886_v50  ;;  %v1908_v56 = vld [vmem:[#allocation7 + $0xa0] sm:$0xff]  ;;  %v1913_v58 = vld [vmem:[#allocation7 + $0x88] sm:$0xff]  ;;  %v1918_v59 = vld [vmem:[#allocation7 + $0x70] sm:$0xff] }
  0x3a   :  { %312 = vmatpush.msrb.mxu0 %v1779_v35  ;;  %215 = vmatpush.msra.mxu1 %v144_v10  ;;  %2454 = vst [vmem:[#allocation23_spill] sm:$0xff] %v1893_v52  ;;  %v1923_v60 = vld [vmem:[#allocation7 + $0x58] sm:$0xff]  ;;  %v1928_v62 = vld [vmem:[#allocation7 + $0x40] sm:$0xff]  ;;  %v1933_v63 = vld [vmem:[#allocation7 + $0x28] sm:$0xff] }
  0x3b   :  { %235 = vmatpush.msra.mxu2 %v145_v19  ;;  %254 = vmatpush.msra.mxu3 %v149_v20  ;;  %2455 = vst [vmem:[#allocation24_spill] sm:$0xff] %v1928_v62  ;;  %v1938_v0 = vld [vmem:[#allocation7 + $0x10] sm:$0xff]  ;;  %v192_v3 = vld [vmem:[%s2419_s5] sm:$0x7] }
  0x3c   :  { %313 = vmatpush.msrb.mxu0 %v1781_v37  ;;  %330 = vmatpush.msrb.mxu1 %v1810_v12  ;;  %2456 = vst [vmem:[#allocation25_spill] sm:$0xff] %v1933_v63  ;;  %v194_v4 = vperm.slane %v192_v3, 0  ;;  %v195_v10 = vperm.slane %v192_v3, 1 }
  0x3d   :  { %350 = vmatpush.msrb.mxu2 %v1821_v22  ;;  %255 = vmatpush.msra.mxu3 %v146_v36  ;;  %2457 = vst [vmem:[#allocation26_spill] sm:$0xff] %v1938_v0 }
  0x3e   :  { %314 = vmatpush.msrb.mxu0 %v1784_v41  ;;  %331 = vmatpush.msrb.mxu1 %v1813_v16 }
  0x3f   :  { %351 = vmatpush.msrb.mxu2 %v1827_v24  ;;  %418 = vmatpush.msrb.mxu3 %v1773_v28 }
  0x40   :  { %315 = vmatpush.msrb.mxu0 %v1787_v45  ;;  %332 = vmatpush.msrb.mxu1 %v1819_v21 }
  0x41   :  { %352 = vmatpush.msrb.mxu2 %v1833_v26  ;;  %419 = vmatpush.msrb.mxu3 %v1776_v32 }
  0x42   :  { %316 = vmatpush.msrb.mxu0 %v1790_v49  ;;  %333 = vmatpush.msrb.mxu1 %v1825_v23 }
  0x43   :  { %353 = vmatpush.msrb.mxu2 %v1862_v40  ;;  %420 = vmatpush.msrb.mxu3 %v1779_v35 }
  0x44   :  { %317 = vmatpush.msrb.mxu0 %v1793_v53  ;;  %334 = vmatpush.msrb.mxu1 %v1831_v25 }
  0x45   :  { %354 = vmatpush.msrb.mxu2 %v1870_v44  ;;  %421 = vmatpush.msrb.mxu3 %v1781_v37 }
  0x46   :  { %318 = vmatpush.msrb.mxu0 %v1796_v57  ;;  %335 = vmatpush.msrb.mxu1 %v1837_v27 }
  0x47   :  { %355 = vmatpush.msrb.mxu2 %v1882_v48  ;;  %422 = vmatpush.msrb.mxu3 %v1784_v41 }
  0x48   :  { %319 = vmatpush.msrb.mxu0 %v1799_v61  ;;  %336 = vmatpush.msrb.mxu1 %v1841_v29 }
  0x49   :  { %356 = vmatpush.msrb.mxu2 %v1889_v51  ;;  %423 = vmatpush.msrb.mxu3 %v1787_v45 }
  0x4a   :  { %320 = vmatpush.msrb.mxu0 %v1802_v2  ;;  %337 = vmatpush.msrb.mxu1 %v1844_v30 }
  0x4b   :  { %357 = vmatpush.msrb.mxu2 %v1897_v54  ;;  %424 = vmatpush.msrb.mxu3 %v1790_v49 }
  0x4c   :  { %321 = vmatpush.msrb.mxu0 %v1805_v6  ;;  %338 = vmatpush.msrb.mxu1 %v1847_v31 }
  0x4d   :  { %358 = vmatpush.msrb.mxu2 %v1903_v55  ;;  %425 = vmatpush.msrb.mxu3 %v1793_v53 }
  0x4e   :  { %322 = vmatpush.msrb.mxu0 %v1808_v11  ;;  %339 = vmatpush.msrb.mxu1 %v1850_v33 }
  0x4f   :  { %359 = vmatpush.msrb.mxu2 %v1908_v56  ;;  %426 = vmatpush.msrb.mxu3 %v1796_v57 }
  0x50   :  { %323 = vmatpush.msrb.mxu0 %v1816_v17  ;;  %340 = vmatpush.msrb.mxu1 %v1853_v34 }
  0x51   :  { %360 = vmatpush.msrb.mxu2 %v1913_v58  ;;  %427 = vmatpush.msrb.mxu3 %v1799_v61 }
  0x52   :  { %324 = vmatpush.msrb.mxu0 %v1857_v38  ;;  %341 = vmatpush.msrb.mxu1 %v1859_v39 }
  0x53   :  { %361 = vmatpush.msrb.mxu2 %v1918_v59  ;;  %428 = vmatpush.msrb.mxu3 %v1802_v2 }
  0x54   :  { %325 = vmatpush.msrb.mxu0 %v1866_v42  ;;  %342 = vmatpush.msrb.mxu1 %v1868_v43 }
  0x55   :  { %362 = vmatpush.msrb.mxu2 %v1923_v60  ;;  %429 = vmatpush.msrb.mxu3 %v1805_v6 }
  0x56   :  { %343 = vmatpush.msrb.mxu1 %v1880_v47 }
  0x57   :  { %363 = vmatpush.msrb.mxu2 %v1928_v62  ;;  %430 = vmatpush.msrb.mxu3 %v1808_v11 }
  0x58   :  { %344 = vmatpush.msrb.mxu1 %v1886_v50 }
  0x59   :  { %364 = vmatpush.msrb.mxu2 %v1933_v63  ;;  %431 = vmatpush.msrb.mxu3 %v1816_v17 }
  0x5a   :  { %345 = vmatpush.msrb.mxu1 %v1893_v52 }
  0x5b   :  { %365 = vmatpush.msrb.mxu2 %v1938_v0  ;;  %432 = vmatpush.msrb.mxu3 %v1857_v38 }
  0x5d   :  { %433 = vmatpush.msrb.mxu3 %v1866_v42 }
  0x89   :  { %v104_v13 = vpop.permute.xlu0 %103 }
  0x8a   :  { %vm105_vm0 = vcmp.eq.s32.totalorder %v101_v7, %v104_v13 }
  0x8b   :  { %1373 = vmatmul.msk.f32.vlgmr.msra.gmra.mxu0 %vm105_vm0, %v1700_v18 }
  0x8c   :  { %438 = vmatpush.msra.mxu0 %v1810_v12 }
  0x8e   :  { %439 = vmatpush.msra.mxu0 %v1813_v16 }
  0x90   :  { %440 = vmatpush.msra.mxu0 %v1819_v21 }
  0x92   :  { %441 = vmatpush.msra.mxu0 %v1825_v23 }
  0x93   :  { %326 = vmatmul.f32.vlgmr.msrb.gmra.mxu0 %v1878_v46 }
  0x94   :  { %442 = vmatpush.msra.mxu0 %v1831_v25 }
  0x96   :  { %443 = vmatpush.msra.mxu0 %v1837_v27 }
  0x98   :  { %444 = vmatpush.msra.mxu0 %v1841_v29 }
  0x9a   :  { %445 = vmatpush.msra.mxu0 %v1844_v30 }
  0x9c   :  { %446 = vmatpush.msra.mxu0 %v1847_v31 }
  0x9e   :  { %447 = vmatpush.msra.mxu0 %v1850_v33 }
  0xa0   :  { %448 = vmatpush.msra.mxu0 %v1853_v34 }
  0xa2   :  { %449 = vmatpush.msra.mxu0 %v1859_v39 }
  0xa4   :  { %450 = vmatpush.msra.mxu0 %v1868_v43 }
  0xa6   :  { %451 = vmatpush.msra.mxu0 %v1880_v47 }
  0xa8   :  { %452 = vmatpush.msra.mxu0 %v1886_v50 }
  0xaa   :  { %453 = vmatpush.msra.mxu0 %v1893_v52 }
  0xac   :  { %581 = vmatpush.msrb.mxu0 %v1821_v22 }
  0xae   :  { %582 = vmatpush.msrb.mxu0 %v1827_v24 }
  0xb0   :  { %583 = vmatpush.msrb.mxu0 %v1833_v26 }
  0xb2   :  { %584 = vmatpush.msrb.mxu0 %v1862_v40 }
  0xb4   :  { %585 = vmatpush.msrb.mxu0 %v1870_v44 }
  0xb6   :  { %586 = vmatpush.msrb.mxu0 %v1882_v48 }
  0xb8   :  { %587 = vmatpush.msrb.mxu0 %v1889_v51 }
  0xba   :  { %588 = vmatpush.msrb.mxu0 %v1897_v54 }
  0xbc   :  { %589 = vmatpush.msrb.mxu0 %v1903_v55 }
  0xbe   :  { %590 = vmatpush.msrb.mxu0 %v1908_v56 }
  0xc0   :  { %591 = vmatpush.msrb.mxu0 %v1913_v58 }
  0xc2   :  { %592 = vmatpush.msrb.mxu0 %v1918_v59 }
  0xc4   :  { %593 = vmatpush.msrb.mxu0 %v1923_v60 }
  0xc6   :  { %594 = vmatpush.msrb.mxu0 %v1928_v62 }
  0xc8   :  { %595 = vmatpush.msrb.mxu0 %v1933_v63 }
  0xca   :  { %596 = vmatpush.msrb.mxu0 %v1938_v0 }
 0x108   :  { %v141_v1 = vpop.f32.mrf.mxu0 }
 0x109   :  { %216 = vmatmul.f32.vlgmr.msra.gmra.mxu1 %v141_v1  ;;  %236 = vmatmul.f32.vlgmr.msra.gmra.mxu2 %v141_v1 }
 0x10a   :  { %256 = vmatmul.f32.vlgmr.msra.gmra.mxu3 %v141_v1  ;;  %458 = vmatpush.msra.mxu1 %v1821_v22 }
 0x10b   :  { %541 = vmatpush.msra.mxu2 %v1773_v28  ;;  %561 = vmatpush.msra.mxu3 %v1810_v12 }
 0x10c   :  { %459 = vmatpush.msra.mxu1 %v1827_v24 }
 0x10d   :  { %542 = vmatpush.msra.mxu2 %v1776_v32  ;;  %562 = vmatpush.msra.mxu3 %v1813_v16 }
 0x10e   :  { %460 = vmatpush.msra.mxu1 %v1833_v26 }
 0x10f   :  { %543 = vmatpush.msra.mxu2 %v1779_v35  ;;  %563 = vmatpush.msra.mxu3 %v1819_v21 }
 0x110   :  { %461 = vmatpush.msra.mxu1 %v1862_v40  ;;  %v327_v7 = vpop.f32.mrf.mxu0 }
 0x111   :  { %346 = vmatmul.f32.vlgmr.msrb.gmra.mxu1 %v1878_v46  ;;  %366 = vmatmul.f32.vlgmr.msrb.gmra.mxu2 %v1878_v46 }
 0x112   :  { %462 = vmatpush.msra.mxu1 %v1870_v44  ;;  %544 = vmatpush.msra.mxu2 %v1781_v37 }
 0x113   :  { %564 = vmatpush.msra.mxu3 %v1825_v23 }
 0x114   :  { %463 = vmatpush.msra.mxu1 %v1882_v48  ;;  %545 = vmatpush.msra.mxu2 %v1784_v41 }
 0x115   :  { %565 = vmatpush.msra.mxu3 %v1831_v25 }
 0x116   :  { %464 = vmatpush.msra.mxu1 %v1889_v51  ;;  %546 = vmatpush.msra.mxu2 %v1787_v45 }
 0x117   :  { %566 = vmatpush.msra.mxu3 %v1837_v27 }
 0x118   :  { %465 = vmatpush.msra.mxu1 %v1897_v54  ;;  %547 = vmatpush.msra.mxu2 %v1790_v49 }
 0x119   :  { %567 = vmatpush.msra.mxu3 %v1841_v29 }
 0x11a   :  { %466 = vmatpush.msra.mxu1 %v1903_v55  ;;  %548 = vmatpush.msra.mxu2 %v1793_v53 }
 0x11b   :  { %568 = vmatpush.msra.mxu3 %v1844_v30 }
 0x11c   :  { %467 = vmatpush.msra.mxu1 %v1908_v56  ;;  %549 = vmatpush.msra.mxu2 %v1796_v57 }
 0x11d   :  { %569 = vmatpush.msra.mxu3 %v1847_v31 }
 0x11e   :  { %468 = vmatpush.msra.mxu1 %v1913_v58  ;;  %550 = vmatpush.msra.mxu2 %v1799_v61 }
 0x11f   :  { %570 = vmatpush.msra.mxu3 %v1850_v33 }
 0x120   :  { %469 = vmatpush.msra.mxu1 %v1918_v59  ;;  %551 = vmatpush.msra.mxu2 %v1802_v2 }
 0x121   :  { %571 = vmatpush.msra.mxu3 %v1853_v34 }
 0x122   :  { %470 = vmatpush.msra.mxu1 %v1923_v60  ;;  %552 = vmatpush.msra.mxu2 %v1805_v6 }
 0x123   :  { %572 = vmatpush.msra.mxu3 %v1859_v39 }
 0x124   :  { %471 = vmatpush.msra.mxu1 %v1928_v62  ;;  %553 = vmatpush.msra.mxu2 %v1808_v11 }
 0x125   :  { %573 = vmatpush.msra.mxu3 %v1868_v43 }
 0x126   :  { %472 = vmatpush.msra.mxu1 %v1933_v63  ;;  %554 = vmatpush.msra.mxu2 %v1816_v17 }
 0x127   :  { %574 = vmatpush.msra.mxu3 %v1880_v47 }
 0x128   :  { %473 = vmatpush.msra.mxu1 %v1938_v0  ;;  %555 = vmatpush.msra.mxu2 %v1857_v38 }
 0x129   :  { %575 = vmatpush.msra.mxu3 %v1886_v50 }
 0x12a   :  { %663 = vmatpush.msrb.mxu1 %v1773_v28  ;;  %556 = vmatpush.msra.mxu2 %v1866_v42 }
 0x12b   :  { %576 = vmatpush.msra.mxu3 %v1893_v52 }
 0x12c   :  { %664 = vmatpush.msrb.mxu1 %v1776_v32  ;;  %683 = vmatpush.msrb.mxu2 %v1810_v12 }
 0x12e   :  { %665 = vmatpush.msrb.mxu1 %v1779_v35  ;;  %684 = vmatpush.msrb.mxu2 %v1813_v16 }
 0x130   :  { %666 = vmatpush.msrb.mxu1 %v1781_v37  ;;  %685 = vmatpush.msrb.mxu2 %v1819_v21 }
 0x132   :  { %667 = vmatpush.msrb.mxu1 %v1784_v41  ;;  %686 = vmatpush.msrb.mxu2 %v1825_v23 }
 0x134   :  { %668 = vmatpush.msrb.mxu1 %v1787_v45  ;;  %687 = vmatpush.msrb.mxu2 %v1831_v25 }
 0x136   :  { %669 = vmatpush.msrb.mxu1 %v1790_v49  ;;  %688 = vmatpush.msrb.mxu2 %v1837_v27 }
 0x138   :  { %670 = vmatpush.msrb.mxu1 %v1793_v53  ;;  %689 = vmatpush.msrb.mxu2 %v1841_v29 }
 0x13a   :  { %671 = vmatpush.msrb.mxu1 %v1796_v57  ;;  %690 = vmatpush.msrb.mxu2 %v1844_v30 }
 0x13c   :  { %672 = vmatpush.msrb.mxu1 %v1799_v61  ;;  %691 = vmatpush.msrb.mxu2 %v1847_v31 }
 0x13e   :  { %673 = vmatpush.msrb.mxu1 %v1802_v2  ;;  %692 = vmatpush.msrb.mxu2 %v1850_v33 }
 0x140   :  { %674 = vmatpush.msrb.mxu1 %v1805_v6  ;;  %693 = vmatpush.msrb.mxu2 %v1853_v34 }
 0x142   :  { %675 = vmatpush.msrb.mxu1 %v1808_v11  ;;  %694 = vmatpush.msrb.mxu2 %v1859_v39 }
 0x144   :  { %676 = vmatpush.msrb.mxu1 %v1816_v17  ;;  %695 = vmatpush.msrb.mxu2 %v1868_v43 }
 0x146   :  { %677 = vmatpush.msrb.mxu1 %v1857_v38  ;;  %696 = vmatpush.msrb.mxu2 %v1880_v47 }
 0x148   :  { %678 = vmatpush.msrb.mxu1 %v1866_v42  ;;  %697 = vmatpush.msrb.mxu2 %v1886_v50 }
 0x14a   :  { %698 = vmatpush.msrb.mxu2 %v1893_v52 }
 0x186   :  { %v217_v5 = vpop.f32.mrf.mxu1 }
 0x187   :  { %v2056_v8 = vadd.f32 %v217_v5, %v194_v4 }
 0x189   :  { %2458 = vst [vmem:[#allocation27_spill] sm:$0xff] %v2056_v8  ;;  %v370_v9 = vadd.f32 %v327_v7, %v2056_v8 }
 0x18b   :  { %v1374_v13 = vmul.f32 -1.442695, %v370_v9  ;;  %v2065_v9 = vld [vmem:[%s2420_s6] sm:$0x1] }
 0x18c   :  { %v237_v14 = vpop.f32.mrf.mxu2  ;;  %2460 = vst [vmem:[#allocation29_spill] sm:$0xff] %v2065_v9 }
 0x18d   :  { %1404 = vpow2.f32 %v1374_v13  ;;  %v2059_v15 = vadd.f32 %v237_v14, %v195_v10 }
 0x18e   :  { %v347_v18 = vpop.f32.mrf.mxu1 }
 0x18f   :  { %2459 = vst [vmem:[#allocation28_spill] sm:$0xff] %v2059_v15  ;;  %v390_v19 = vadd.f32 %v347_v18, %v2059_v15 }
 0x191   :  { %v1375_v20 = vmul.f32 -1.442695, %v390_v19 }
 0x193   :  { %v1405_v36 = vpop.eup %1404  ;;  %1406 = vpow2.f32 %v1375_v20  ;;  %v196_v20 = vperm.slane %v192_v3, 2 }
 0x194   :  { %v374_v1 = vadd.f32 1.0, %v1405_v36  ;;  %v367_v10 = vpop.f32.mrf.mxu2  ;;  %v257_v36 = vpop.f32.mrf.mxu3 }
 0x195   :  { %v2068_v38 = vadd.f32 %v257_v36, %v196_v20  ;;  %v2469_v20 = vld [vmem:[#allocation23_spill] sm:$0xff] }
 0x196   :  { %1408 = vrcp.f32 %v374_v1  ;;  %v386_v13 = vand.u32 2147483648, %v374_v1  ;;  %v384_v18 = vand.u32 2147483647, %v374_v1  ;;  %vm380_vm2 = vweird.f32 %v374_v1 }
 0x198   :  { %vm385_vm4 = vcmp.eq.f32.partialorder %v384_v18, 8.507059e+37  ;;  %v2467_v18 = vld [vmem:[#allocation26_spill] sm:$0xff] }
 0x199   :  { %v1407_v52 = vpop.eup %1406 }
 0x19a   :  { %v394_v42 = vadd.f32 1.0, %v1407_v52  ;;  %v410_v52 = vadd.f32 %v367_v10, %v2065_v9 }
 0x19c   :  { %v1409_v4 = vpop.eup %1408  ;;  %1410 = vrcp.f32 %v394_v42  ;;  %v404_v62 = vand.u32 2147483647, %v394_v42  ;;  %vm400_vm6 = vweird.f32 %v394_v42 }
 0x19d   :  { %v376_v5 = vmul.f32 %v1409_v4, %v374_v1  ;;  %vm381_vm1 = vweird.f32 %v1409_v4 }
 0x19e   :  { %vm382_vm3 = vmor %vm380_vm2, %vm381_vm1  ;;  %vm405_vm8 = vcmp.eq.f32.partialorder %v404_v62, 8.507059e+37  ;;  %v2465_v62 = vld [vmem:[#allocation19_spill] sm:$0xff] }
 0x19f   :  { %v377_v7 = vsub.f32 1.0, %v376_v5  ;;  %v387_v5 = vor.u32 1.1754944e-38, %v386_v13 }
 0x1a1   :  { %v378_v14 = vmul.f32 %v1409_v4, %v377_v7  ;;  %v406_v7 = vand.u32 2147483648, %v394_v42 }
 0x1a2   :  { %v1411_v19 = vpop.eup %1410 }
 0x1a3   :  { %v396_v8 = vmul.f32 %v1411_v19, %v394_v42  ;;  %v379_v15 = vadd.f32 %v1409_v4, %v378_v14  ;;  %vm401_vm5 = vweird.f32 %v1411_v19  ;;  %v407_v1 = vor.u32 1.1754944e-38, %v406_v7  ;;  %v2462_v42 = vld [vmem:[#allocation18_spill] sm:$0xff] }
 0x1a4   :  { %vm402_vm7 = vmor %vm400_vm6, %vm401_vm5 }
 0x1a5   :  { %v397_v0 = vsub.f32 1.0, %v396_v8  ;;  %v383_v50 = vsel %vm382_vm3, %v1409_v4, %v379_v15 }
 0x1a6   :  { %v388_v63 = vsel %vm385_vm4, %v387_v5, %v383_v50  ;;  %v2470_v5 = vld [vmem:[#allocation28_spill] sm:$0xff] }
 0x1a7   :  { %v398_v47 = vmul.f32 %v1411_v19, %v397_v0  ;;  %v411_v17 = vmul.f32 %v410_v52, %v388_v63  ;;  %v2466_v63 = vld [vmem:[#allocation22_spill] sm:$0xff] }
 0x1a9   :  { %v399_v3 = vadd.f32 %v1411_v19, %v398_v47  ;;  %v412_v14 = vadd.f32 %v411_v17, %v2068_v38  ;;  %v2461_v17 = vld [vmem:[#allocation24_spill] sm:$0xff]  ;;  %v2464_v47 = vld [vmem:[#allocation25_spill] sm:$0xff] }
 0x1ab   :  { %v403_v10 = vsel %vm402_vm7, %v1411_v19, %v399_v3  ;;  %1412 = vtanh.f32 %v412_v14  ;;  %v2468_v19 = vld [vmem:[#allocation20_spill] sm:$0xff] }
 0x1ac   :  { %v408_v8 = vsel %vm405_vm8, %v407_v1, %v403_v10  ;;  %v2471_v10 = vld [vmem:[#allocation27_spill] sm:$0xff] }
 0x1ad   :  { %v414_v15 = vsub.f32 1.0, %v408_v8  ;;  %v416_v50 = vmul.f32 %v408_v8, %v1878_v46  ;;  %v2463_v46 = vld [vmem:[#allocation21_spill] sm:$0xff] }
 0x1b1   :  { %v1413_v4 = vpop.eup %1412 }
 0x1b2   :  { %v415_v13 = vmul.f32 %v1413_v4, %v414_v15 }
 0x1b4   :  { %v2072_v0 = vadd.f32 %v416_v50, %v415_v13 }
 0x1b6   :  { %434 = vmatmul.f32.vlgmr.msrb.gmra.mxu3 %v2072_v0  ;;  %454 = vmatmul.f32.vlgmr.msra.gmra.mxu0 %v2072_v0 }
 0x1b7   :  { %474 = vmatmul.f32.vlgmr.msra.gmra.mxu1 %v2072_v0  ;;  %703 = vmatpush.msrb.mxu3 %v1821_v22 }
 0x1b8   :  { %785 = vmatpush.msra.mxu0 %v1773_v28  ;;  %805 = vmatpush.msra.mxu1 %v1810_v12 }
 0x1b9   :  { %704 = vmatpush.msrb.mxu3 %v1827_v24 }
 0x1ba   :  { %786 = vmatpush.msra.mxu0 %v1776_v32  ;;  %806 = vmatpush.msra.mxu1 %v1813_v16 }
 0x1bb   :  { %705 = vmatpush.msrb.mxu3 %v1833_v26 }
 0x1bc   :  { %787 = vmatpush.msra.mxu0 %v1779_v35  ;;  %807 = vmatpush.msra.mxu1 %v1819_v21 }
 0x1bd   :  { %706 = vmatpush.msrb.mxu3 %v1862_v40 }
 0x1be   :  { %788 = vmatpush.msra.mxu0 %v1781_v37  ;;  %808 = vmatpush.msra.mxu1 %v1825_v23 }
 0x1bf   :  { %707 = vmatpush.msrb.mxu3 %v1870_v44 }
 0x1c0   :  { %789 = vmatpush.msra.mxu0 %v1784_v41  ;;  %809 = vmatpush.msra.mxu1 %v1831_v25 }
 0x1c1   :  { %708 = vmatpush.msrb.mxu3 %v1882_v48 }
 0x1c2   :  { %790 = vmatpush.msra.mxu0 %v1787_v45  ;;  %810 = vmatpush.msra.mxu1 %v1837_v27 }
 0x1c3   :  { %709 = vmatpush.msrb.mxu3 %v1889_v51 }
 0x1c4   :  { %791 = vmatpush.msra.mxu0 %v1790_v49  ;;  %811 = vmatpush.msra.mxu1 %v1841_v29 }
 0x1c5   :  { %710 = vmatpush.msrb.mxu3 %v1897_v54 }
 0x1c6   :  { %792 = vmatpush.msra.mxu0 %v1793_v53  ;;  %812 = vmatpush.msra.mxu1 %v1844_v30 }
 0x1c7   :  { %711 = vmatpush.msrb.mxu3 %v1903_v55 }
 0x1c8   :  { %793 = vmatpush.msra.mxu0 %v1796_v57  ;;  %813 = vmatpush.msra.mxu1 %v1847_v31 }
 0x1c9   :  { %712 = vmatpush.msrb.mxu3 %v1908_v56 }
 0x1ca   :  { %794 = vmatpush.msra.mxu0 %v1799_v61  ;;  %814 = vmatpush.msra.mxu1 %v1850_v33 }
 0x1cb   :  { %713 = vmatpush.msrb.mxu3 %v1913_v58 }
 0x1cc   :  { %795 = vmatpush.msra.mxu0 %v1802_v2  ;;  %815 = vmatpush.msra.mxu1 %v1853_v34 }
 0x1cd   :  { %714 = vmatpush.msrb.mxu3 %v1918_v59 }
 0x1ce   :  { %796 = vmatpush.msra.mxu0 %v1805_v6  ;;  %816 = vmatpush.msra.mxu1 %v1859_v39 }
 0x1cf   :  { %715 = vmatpush.msrb.mxu3 %v1923_v60 }
 0x1d0   :  { %797 = vmatpush.msra.mxu0 %v1808_v11  ;;  %817 = vmatpush.msra.mxu1 %v1868_v43 }
 0x1d1   :  { %716 = vmatpush.msrb.mxu3 %v2461_v17 }
 0x1d2   :  { %798 = vmatpush.msra.mxu0 %v2462_v42  ;;  %818 = vmatpush.msra.mxu1 %v2463_v46 }
 0x1d3   :  { %717 = vmatpush.msrb.mxu3 %v2464_v47 }
 0x1d4   :  { %799 = vmatpush.msra.mxu0 %v2465_v62  ;;  %819 = vmatpush.msra.mxu1 %v2466_v63 }
 0x1d5   :  { %718 = vmatpush.msrb.mxu3 %v2467_v18 }
 0x1d6   :  { %800 = vmatpush.msra.mxu0 %v2468_v19  ;;  %820 = vmatpush.msra.mxu1 %v2469_v20 }
 0x233   :  { %v455_v36 = vpop.f32.mrf.mxu0 }
 0x234   :  { %v502_v52 = vrot.slane %v455_v36, 7 }
 0x236   :  { %v504_v7 = vadd.f32 %v502_v52, %v2470_v5  ;;  %v475_v52 = vpop.f32.mrf.mxu1 }
 0x238   :  { %v1377_v3 = vmul.f32 -1.442695, %v504_v7 }
 0x239   :  { %v435_v14 = vpop.f32.mrf.mxu3 }
 0x23a   :  { %1414 = vpow2.f32 %v1377_v3  ;;  %v479_v1 = vrot.slane %v435_v14, 7  ;;  %v524_v3 = vadd.f32 %v475_v52, %v2065_v9 }
 0x23c   :  { %v481_v8 = vadd.f32 %v479_v1, %v2471_v10 }
 0x23e   :  { %v1376_v15 = vmul.f32 -1.442695, %v481_v8 }
 0x240   :  { %v1415_v4 = vpop.eup %1414  ;;  %1416 = vpow2.f32 %v1376_v15 }
 0x241   :  { %v508_v13 = vadd.f32 1.0, %v1415_v4 }
 0x243   :  { %1418 = vrcp.f32 %v508_v13  ;;  %vm514_vm14 = vweird.f32 %v508_v13 }
 0x246   :  { %v1417_v50 = vpop.eup %1416 }
 0x247   :  { %v485_v18 = vadd.f32 1.0, %v1417_v50  ;;  %v526_v50 = vrot.slane %v524_v3, 7 }
 0x249   :  { %1420 = vrcp.f32 %v485_v18  ;;  %v1419_v19 = vpop.eup %1418  ;;  %v497_v5 = vand.u32 2147483648, %v485_v18  ;;  %v495_v1 = vand.u32 2147483647, %v485_v18  ;;  %vm491_vm10 = vweird.f32 %v485_v18 }
 0x24a   :  { %v510_v20 = vmul.f32 %v1419_v19, %v508_v13  ;;  %vm515_vm13 = vweird.f32 %v1419_v19 }
 0x24b   :  { %v498_v4 = vor.u32 1.1754944e-38, %v497_v5  ;;  %vm496_vm12 = vcmp.eq.f32.partialorder %v495_v1, 8.507059e+37  ;;  %vm516_vm15 = vmor %vm514_vm14, %vm515_vm13  ;;  %v534_v5 = vrot.slane %v2072_v0, 7 }
 0x24c   :  { %v511_v62 = vsub.f32 1.0, %v510_v20  ;;  %v520_v20 = vand.u32 2147483648, %v508_v13 }
 0x24e   :  { %v512_v8 = vmul.f32 %v1419_v19, %v511_v62  ;;  %v521_v9 = vor.u32 1.1754944e-38, %v520_v20 }
 0x24f   :  { %v1421_v63 = vpop.eup %1420 }
 0x250   :  { %v487_v36 = vmul.f32 %v1421_v63, %v485_v18  ;;  %vm492_vm9 = vweird.f32 %v1421_v63  ;;  %v513_v46 = vadd.f32 %v1419_v19, %v512_v8 }
 0x251   :  { %vm493_vm11 = vmor %vm491_vm10, %vm492_vm9  ;;  %vm1270_vm9 = vcmask 1040384   ;;  %vm1272_vm10 = vcmask 1041408  }
 0x252   :  { %v488_v7 = vsub.f32 1.0, %v487_v36  ;;  %v518_v36 = vand.u32 2147483647, %v508_v13 }
 0x254   :  { %v489_v14 = vmul.f32 %v1421_v63, %v488_v7  ;;  %v517_v7 = vsel %vm516_vm15, %v1419_v19, %v513_v46  ;;  %vm519_vm0 = vcmp.eq.f32.partialorder %v518_v36, 8.507059e+37 }
 0x255   :  { %v522_v62 = vsel %vm519_vm0, %v521_v9, %v517_v7  ;;  %v2481_v9 = vld [vmem:[#allocation28_spill] sm:$0xff] }
 0x256   :  { %v490_v15 = vadd.f32 %v1421_v63, %v489_v14  ;;  %v531_v18 = vsub.f32 1.0, %v522_v62  ;;  %v536_v14 = vmul.f32 %v534_v5, %v522_v62  ;;  %v2482_v5 = vld [vmem:[#allocation29_spill] sm:$0xff] }
 0x258   :  { %v494_v10 = vsel %vm493_vm11, %v1421_v63, %v490_v15 }
 0x259   :  { %v499_v47 = vsel %vm496_vm12, %v498_v4, %v494_v10 }
 0x25a   :  { %v528_v42 = vmul.f32 %v526_v50, %v499_v47 }
 0x25c   :  { %v529_v52 = vadd.f32 %v528_v42, %v2068_v38 }
 0x25e   :  { %1422 = vtanh.f32 %v529_v52 }
 0x264   :  { %v1423_v63 = vpop.eup %1422 }
 0x265   :  { %v532_v3 = vmul.f32 %v1423_v63, %v531_v18 }
 0x267   :  { %v2130_v10 = vadd.f32 %v536_v14, %v532_v3 }
 0x269   :  { %v539_v47 = vrot.slane %v2130_v10, 1 }
 0x26b   :  { %557 = vmatmul.f32.vlgmr.msra.gmra.mxu2 %v539_v47  ;;  %577 = vmatmul.f32.vlgmr.msra.gmra.mxu3 %v539_v47 }
 0x26c   :  { %597 = vmatmul.f32.vlgmr.msrb.gmra.mxu0 %v539_v47  ;;  %825 = vmatpush.msra.mxu2 %v1821_v22 }
 0x26d   :  { %907 = vmatpush.msra.mxu3 %v1773_v28  ;;  %927 = vmatpush.msrb.mxu0 %v1810_v12  ;;  %v2472_v28 = vld [vmem:[#allocation18_spill] sm:$0xff] }
 0x26e   :  { %826 = vmatpush.msra.mxu2 %v1827_v24 }
 0x26f   :  { %908 = vmatpush.msra.mxu3 %v1776_v32  ;;  %928 = vmatpush.msrb.mxu0 %v1813_v16  ;;  %v2473_v32 = vld [vmem:[#allocation21_spill] sm:$0xff] }
 0x270   :  { %827 = vmatpush.msra.mxu2 %v1833_v26 }
 0x271   :  { %909 = vmatpush.msra.mxu3 %v1779_v35  ;;  %929 = vmatpush.msrb.mxu0 %v1819_v21  ;;  %v2474_v35 = vld [vmem:[#allocation25_spill] sm:$0xff] }
 0x272   :  { %828 = vmatpush.msra.mxu2 %v1862_v40 }
 0x273   :  { %910 = vmatpush.msra.mxu3 %v1781_v37  ;;  %930 = vmatpush.msrb.mxu0 %v1825_v23  ;;  %v2475_v37 = vld [vmem:[#allocation19_spill] sm:$0xff] }
 0x274   :  { %829 = vmatpush.msra.mxu2 %v1870_v44 }
 0x275   :  { %911 = vmatpush.msra.mxu3 %v1784_v41  ;;  %931 = vmatpush.msrb.mxu0 %v1831_v25  ;;  %v2476_v41 = vld [vmem:[#allocation22_spill] sm:$0xff] }
 0x276   :  { %830 = vmatpush.msra.mxu2 %v1882_v48 }
 0x277   :  { %912 = vmatpush.msra.mxu3 %v1787_v45  ;;  %932 = vmatpush.msrb.mxu0 %v1837_v27  ;;  %v2477_v45 = vld [vmem:[#allocation26_spill] sm:$0xff] }
 0x278   :  { %831 = vmatpush.msra.mxu2 %v1889_v51 }
 0x279   :  { %913 = vmatpush.msra.mxu3 %v1790_v49  ;;  %933 = vmatpush.msrb.mxu0 %v1841_v29  ;;  %v2478_v49 = vld [vmem:[#allocation20_spill] sm:$0xff] }
 0x27a   :  { %832 = vmatpush.msra.mxu2 %v1897_v54 }
 0x27b   :  { %914 = vmatpush.msra.mxu3 %v1793_v53  ;;  %934 = vmatpush.msrb.mxu0 %v1844_v30  ;;  %v2479_v53 = vld [vmem:[#allocation23_spill] sm:$0xff] }
 0x27c   :  { %833 = vmatpush.msra.mxu2 %v1903_v55 }
 0x27d   :  { %915 = vmatpush.msra.mxu3 %v1796_v57  ;;  %935 = vmatpush.msrb.mxu0 %v1847_v31 }
 0x27e   :  { %834 = vmatpush.msra.mxu2 %v1908_v56 }
 0x27f   :  { %916 = vmatpush.msra.mxu3 %v1799_v61  ;;  %936 = vmatpush.msrb.mxu0 %v1850_v33 }
 0x280   :  { %835 = vmatpush.msra.mxu2 %v1913_v58 }
 0x281   :  { %917 = vmatpush.msra.mxu3 %v1802_v2  ;;  %937 = vmatpush.msrb.mxu0 %v1853_v34 }
 0x282   :  { %836 = vmatpush.msra.mxu2 %v1918_v59 }
 0x283   :  { %918 = vmatpush.msra.mxu3 %v1805_v6  ;;  %938 = vmatpush.msrb.mxu0 %v1859_v39 }
 0x284   :  { %837 = vmatpush.msra.mxu2 %v1923_v60 }
 0x285   :  { %919 = vmatpush.msra.mxu3 %v1808_v11  ;;  %939 = vmatpush.msrb.mxu0 %v1868_v43  ;;  %v2480_v11 = vld [vmem:[#allocation27_spill] sm:$0xff] }
 0x286   :  { %838 = vmatpush.msra.mxu2 %v2461_v17 }
 0x287   :  { %920 = vmatpush.msra.mxu3 %v2472_v28  ;;  %940 = vmatpush.msrb.mxu0 %v2473_v32 }
 0x288   :  { %839 = vmatpush.msra.mxu2 %v2474_v35 }
 0x289   :  { %921 = vmatpush.msra.mxu3 %v2475_v37  ;;  %941 = vmatpush.msrb.mxu0 %v2476_v41 }
 0x28a   :  { %840 = vmatpush.msra.mxu2 %v2477_v45 }
 0x28b   :  { %922 = vmatpush.msra.mxu3 %v2478_v49  ;;  %942 = vmatpush.msrb.mxu0 %v2479_v53 }
 0x2e9   :  { %v598_v36 = vpop.f32.mrf.mxu0 }
 0x2ea   :  { %v647_v63 = vadd.f32 %v598_v36, %v2482_v5 }
 0x2ee   :  { %v558_v57 = vpop.f32.mrf.mxu2  ;;  %v578_v61 = vpop.f32.mrf.mxu3 }
 0x2ef   :  { %v602_v2 = vrot.slane %v558_v57, 6  ;;  %v625_v6 = vrot.slane %v578_v61, 6  ;;  %v649_v61 = vrot.slane %v647_v63, 6 }
 0x2f1   :  { %v604_v12 = vadd.f32 %v602_v2, %v2480_v11  ;;  %v627_v42 = vadd.f32 %v625_v6, %v2481_v9 }
 0x2f3   :  { %v1378_v46 = vmul.f32 -1.442695, %v604_v12  ;;  %v1379_v19 = vmul.f32 -1.442695, %v627_v42 }
 0x2f5   :  { %1424 = vpow2.f32 %v1378_v46 }
 0x2f6   :  { %1426 = vpow2.f32 %v1379_v19 }
 0x2fb   :  { %v1425_v13 = vpop.eup %1424 }
 0x2fc   :  { %v1427_v1 = vpop.eup %1426  ;;  %v608_v8 = vadd.f32 1.0, %v1425_v13 }
 0x2fd   :  { %v631_v15 = vadd.f32 1.0, %v1427_v1 }
 0x2fe   :  { %1428 = vrcp.f32 %v608_v8  ;;  %v620_v62 = vand.u32 2147483648, %v608_v8  ;;  %v618_v14 = vand.u32 2147483647, %v608_v8  ;;  %vm614_vm2 = vweird.f32 %v608_v8 }
 0x2ff   :  { %1430 = vrcp.f32 %v631_v15  ;;  %v643_v46 = vand.u32 2147483648, %v631_v15  ;;  %vm637_vm6 = vweird.f32 %v631_v15  ;;  %v641_v19 = vand.u32 2147483647, %v631_v15 }
 0x300   :  { %v621_v57 = vor.u32 1.1754944e-38, %v620_v62  ;;  %vm619_vm4 = vcmp.eq.f32.partialorder %v618_v14, 8.507059e+37  ;;  %v2198_v14 = vld [vmem:[#allocation7 + $0x170] sm:$0xff] }
 0x301   :  { %vm642_vm8 = vcmp.eq.f32.partialorder %v641_v19, 8.507059e+37 }
 0x304   :  { %v1429_v4 = vpop.eup %1428 }
 0x305   :  { %v1431_v50 = vpop.eup %1430  ;;  %v610_v20 = vmul.f32 %v1429_v4, %v608_v8  ;;  %vm615_vm1 = vweird.f32 %v1429_v4 }
 0x306   :  { %v633_v52 = vmul.f32 %v1431_v50, %v631_v15  ;;  %vm616_vm3 = vmor %vm614_vm2, %vm615_vm1  ;;  %vm638_vm5 = vweird.f32 %v1431_v50  ;;  %v1271_v15 = vsel %vm1270_vm9, %v2072_v0, %v2130_v10  ;;  %v2202_v0 = vld [vmem:[#allocation7 + $0x150] sm:$0xff] }
 0x307   :  { %v611_v7 = vsub.f32 1.0, %v610_v20  ;;  %vm639_vm7 = vmor %vm637_vm6, %vm638_vm5  ;;  %v644_v20 = vor.u32 1.1754944e-38, %v643_v46 }
 0x308   :  { %v634_v18 = vsub.f32 1.0, %v633_v52  ;;  %v656_v52 = vrot.slane %v2130_v10, 7  ;;  %v2207_v10 = vld [vmem:[#allocation7 + $0x138] sm:$0xff] }
 0x309   :  { %v612_v3 = vmul.f32 %v1429_v4, %v611_v7 }
 0x30a   :  { %v635_v47 = vmul.f32 %v1431_v50, %v634_v18 }
 0x30b   :  { %v613_v28 = vadd.f32 %v1429_v4, %v612_v3  ;;  %v2195_v3 = vld [vmem:[#allocation7 + $0x168] sm:$0xff] }
 0x30c   :  { %v636_v12 = vadd.f32 %v1431_v50, %v635_v47 }
 0x30d   :  { %v617_v2 = vsel %vm616_vm3, %v1429_v4, %v613_v28  ;;  %vm1274_vm3 = vcmask 1042432  }
 0x30e   :  { %v622_v6 = vsel %vm619_vm4, %v621_v57, %v617_v2  ;;  %v640_v1 = vsel %vm639_vm7, %v1431_v50, %v636_v12 }
 0x30f   :  { %v651_v42 = vmul.f32 %v649_v61, %v622_v6  ;;  %v645_v8 = vsel %vm642_vm8, %v644_v20, %v640_v1 }
 0x310   :  { %v654_v36 = vsub.f32 1.0, %v645_v8  ;;  %v658_v62 = vmul.f32 %v656_v52, %v645_v8 }
 0x311   :  { %v652_v13 = vadd.f32 %v651_v42, %v2068_v38 }
 0x313   :  { %1432 = vtanh.f32 %v652_v13 }
 0x319   :  { %v1433_v4 = vpop.eup %1432 }
 0x31a   :  { %v655_v7 = vmul.f32 %v1433_v4, %v654_v36 }
 0x31c   :  { %v2186_v18 = vadd.f32 %v658_v62, %v655_v7 }
 0x31e   :  { %v661_v63 = vrot.slane %v2186_v18, 2  ;;  %v2192_v50 = vsel %vm1272_vm10, %v1271_v15, %v2186_v18  ;;  %v778_v4 = vrot.slane %v2186_v18, 7  ;;  %v2289_v18 = vld [vmem:[#allocation7 + $0x160] sm:$0xff] }
 0x320   :  { %679 = vmatmul.f32.vlgmr.msrb.gmra.mxu1 %v661_v63  ;;  %699 = vmatmul.f32.vlgmr.msrb.gmra.mxu2 %v661_v63 }
 0x321   :  { %719 = vmatmul.f32.vlgmr.msrb.gmra.mxu3 %v661_v63  ;;  %947 = vmatpush.msrb.mxu1 %v1821_v22  ;;  %v2212_v22 = vld [vmem:[#allocation7 + $0x120] sm:$0xff] }
 0x322   :  { %1029 = vmatpush.msrb.mxu2 %v2195_v3  ;;  %1049 = vmatpush.msrb.mxu3 %v2198_v14 }
 0x323   :  { %948 = vmatpush.msrb.mxu1 %v1827_v24  ;;  %v2217_v24 = vld [vmem:[#allocation7 + $0x108] sm:$0xff] }
 0x324   :  { %1030 = vmatpush.msrb.mxu2 %v2202_v0  ;;  %1050 = vmatpush.msrb.mxu3 %v1813_v16  ;;  %v2222_v16 = vld [vmem:[#allocation7 + $0xf0] sm:$0xff] }
 0x325   :  { %949 = vmatpush.msrb.mxu1 %v1833_v26  ;;  %v2242_v26 = vld [vmem:[#allocation7 + $0x90] sm:$0xff] }
 0x326   :  { %1031 = vmatpush.msrb.mxu2 %v2207_v10  ;;  %1051 = vmatpush.msrb.mxu3 %v1819_v21  ;;  %v2227_v21 = vld [vmem:[#allocation7 + $0xd8] sm:$0xff] }
 0x327   :  { %950 = vmatpush.msrb.mxu1 %v1862_v40 }
 0x328   :  { %1032 = vmatpush.msrb.mxu2 %v2212_v22  ;;  %1052 = vmatpush.msrb.mxu3 %v1825_v23  ;;  %v2232_v23 = vld [vmem:[#allocation7 + $0xc0] sm:$0xff] }
 0x329   :  { %951 = vmatpush.msrb.mxu1 %v1870_v44 }
 0x32a   :  { %1033 = vmatpush.msrb.mxu2 %v2217_v24  ;;  %1053 = vmatpush.msrb.mxu3 %v1831_v25  ;;  %v2237_v25 = vld [vmem:[#allocation7 + $0xa8] sm:$0xff] }
 0x32b   :  { %952 = vmatpush.msrb.mxu1 %v1882_v48 }
 0x32c   :  { %1034 = vmatpush.msrb.mxu2 %v2222_v16  ;;  %1054 = vmatpush.msrb.mxu3 %v1837_v27  ;;  %v2247_v27 = vld [vmem:[#allocation7 + $0x78] sm:$0xff] }
 0x32d   :  { %953 = vmatpush.msrb.mxu1 %v1889_v51 }
 0x32e   :  { %1035 = vmatpush.msrb.mxu2 %v2227_v21  ;;  %1055 = vmatpush.msrb.mxu3 %v1841_v29  ;;  %v2252_v29 = vld [vmem:[#allocation7 + $0x60] sm:$0xff] }
 0x32f   :  { %954 = vmatpush.msrb.mxu1 %v1897_v54 }
 0x330   :  { %1036 = vmatpush.msrb.mxu2 %v2232_v23  ;;  %1056 = vmatpush.msrb.mxu3 %v1844_v30  ;;  %v2257_v30 = vld [vmem:[#allocation7 + $0x48] sm:$0xff] }
 0x331   :  { %955 = vmatpush.msrb.mxu1 %v1903_v55 }
 0x332   :  { %1037 = vmatpush.msrb.mxu2 %v2237_v25  ;;  %1057 = vmatpush.msrb.mxu3 %v1847_v31  ;;  %v2262_v31 = vld [vmem:[#allocation7 + $0x30] sm:$0xff] }
 0x333   :  { %956 = vmatpush.msrb.mxu1 %v1908_v56 }
 0x334   :  { %1038 = vmatpush.msrb.mxu2 %v2242_v26  ;;  %1058 = vmatpush.msrb.mxu3 %v1850_v33 }
 0x335   :  { %957 = vmatpush.msrb.mxu1 %v1913_v58 }
 0x336   :  { %1039 = vmatpush.msrb.mxu2 %v2247_v27  ;;  %1059 = vmatpush.msrb.mxu3 %v1853_v34 }
 0x337   :  { %958 = vmatpush.msrb.mxu1 %v1918_v59 }
 0x338   :  { %1040 = vmatpush.msrb.mxu2 %v2252_v29  ;;  %1060 = vmatpush.msrb.mxu3 %v1859_v39 }
 0x339   :  { %959 = vmatpush.msrb.mxu1 %v1923_v60 }
 0x33a   :  { %1041 = vmatpush.msrb.mxu2 %v2257_v30  ;;  %1061 = vmatpush.msrb.mxu3 %v1868_v43 }
 0x33b   :  { %960 = vmatpush.msrb.mxu1 %v2461_v17 }
 0x33c   :  { %1042 = vmatpush.msrb.mxu2 %v2262_v31  ;;  %1062 = vmatpush.msrb.mxu3 %v2473_v32 }
 0x33d   :  { %961 = vmatpush.msrb.mxu1 %v2474_v35 }
 0x33e   :  { %1043 = vmatpush.msrb.mxu2 %v2475_v37  ;;  %1063 = vmatpush.msrb.mxu3 %v2476_v41 }
 0x33f   :  { %962 = vmatpush.msrb.mxu1 %v2477_v45 }
 0x340   :  { %1044 = vmatpush.msrb.mxu2 %v2478_v49  ;;  %1064 = vmatpush.msrb.mxu3 %v2479_v53 }
 0x39d   :  { %v680_v33 = vpop.f32.mrf.mxu1 }
 0x39e   :  { %v724_v34 = vrot.slane %v680_v33, 5 }
 0x3a0   :  { %v726_v39 = vadd.f32 %v724_v34, %v2480_v11 }
 0x3a2   :  { %v1380_v40 = vmul.f32 -1.442695, %v726_v39  ;;  %v2284_v39 = vld [vmem:[#allocation7 + $0x178] sm:$0xff] }
 0x3a3   :  { %v700_v43 = vpop.f32.mrf.mxu2 }
 0x3a4   :  { %1434 = vpow2.f32 %v1380_v40  ;;  %v747_v44 = vrot.slane %v700_v43, 5  ;;  %v720_v17 = vpop.f32.mrf.mxu3  ;;  %v1505_v40 = vld [vmem:[#allocation7 + $0x158] sm:$0xff]  ;;  %v1507_v43 = vld [vmem:[#allocation7 + $0x140] sm:$0xff] }
 0x3a5   :  { %v769_v45 = vadd.f32 %v720_v17, %v2482_v5  ;;  %v2337_v17 = vld [vmem:[#allocation7 + $0x40] sm:$0xff] }
 0x3a6   :  { %v749_v48 = vadd.f32 %v747_v44, %v2481_v9  ;;  %v2297_v44 = vld [vmem:[#allocation7 + $0x130] sm:$0xff] }
 0x3a7   :  { %v771_v2 = vrot.slane %v769_v45, 5 }
 0x3a8   :  { %v1381_v51 = vmul.f32 -1.442695, %v749_v48  ;;  %v2305_v48 = vld [vmem:[#allocation7 + $0x100] sm:$0xff] }
 0x3aa   :  { %v1435_v54 = vpop.eup %1434  ;;  %1436 = vpow2.f32 %v1381_v51  ;;  %v2309_v51 = vld [vmem:[#allocation7 + $0xe8] sm:$0xff] }
 0x3ab   :  { %v730_v55 = vadd.f32 1.0, %v1435_v54  ;;  %v2313_v54 = vld [vmem:[#allocation7 + $0xd0] sm:$0xff] }
 0x3ad   :  { %1438 = vrcp.f32 %v730_v55  ;;  %v742_v35 = vand.u32 2147483648, %v730_v55  ;;  %v740_v41 = vand.u32 2147483647, %v730_v55  ;;  %vm736_vm12 = vweird.f32 %v730_v55 }
 0x3af   :  { %v743_v28 = vor.u32 1.1754944e-38, %v742_v35  ;;  %vm741_vm14 = vcmp.eq.f32.partialorder %v740_v41, 8.507059e+37  ;;  %v1532_v35 = vld [vmem:[#allocation7 + $0x20] sm:$0xff]  ;;  %v1535_v41 = vld [vmem:[#allocation7 + $0x8] sm:$0xff] }
 0x3b0   :  { %v1437_v56 = vpop.eup %1436 }
 0x3b1   :  { %v753_v58 = vadd.f32 1.0, %v1437_v56  ;;  %v2321_v56 = vld [vmem:[#allocation7 + $0xa0] sm:$0xff] }
 0x3b3   :  { %v1439_v59 = vpop.eup %1438  ;;  %1440 = vrcp.f32 %v753_v58  ;;  %v765_v42 = vand.u32 2147483648, %v753_v58  ;;  %v763_v19 = vand.u32 2147483647, %v753_v58  ;;  %vm759_vm0 = vweird.f32 %v753_v58 }
 0x3b4   :  { %v732_v60 = vmul.f32 %v1439_v59, %v730_v55  ;;  %vm737_vm11 = vweird.f32 %v1439_v59  ;;  %v2317_v55 = vld [vmem:[#allocation7 + $0xb8] sm:$0xff] }
 0x3b5   :  { %vm738_vm13 = vmor %vm736_vm12, %vm737_vm11  ;;  %v766_v20 = vor.u32 1.1754944e-38, %v765_v42  ;;  %vm764_vm2 = vcmp.eq.f32.partialorder %v763_v19, 8.507059e+37  ;;  %vm1276_vm12 = vcmask 1043456  }
 0x3b6   :  { %v733_v32 = vsub.f32 1.0, %v732_v60  ;;  %v2333_v60 = vld [vmem:[#allocation7 + $0x58] sm:$0xff] }
 0x3b8   :  { %v734_v37 = vmul.f32 %v1439_v59, %v733_v32  ;;  %v2341_v32 = vld [vmem:[#allocation7 + $0x28] sm:$0xff] }
 0x3b9   :  { %v1441_v49 = vpop.eup %1440 }
 0x3ba   :  { %v755_v53 = vmul.f32 %v1441_v49, %v753_v58  ;;  %v735_v47 = vadd.f32 %v1439_v59, %v734_v37  ;;  %vm760_vm15 = vweird.f32 %v1441_v49  ;;  %v2325_v58 = vld [vmem:[#allocation7 + $0x88] sm:$0xff]  ;;  %v2344_v37 = vld [vmem:[#allocation7 + $0x10] sm:$0xff] }
 0x3bb   :  { %vm761_vm1 = vmor %vm759_vm0, %vm760_vm15 }
 0x3bc   :  { %v756_v57 = vsub.f32 1.0, %v755_v53  ;;  %v739_v61 = vsel %vm738_vm13, %v1439_v59, %v735_v47  ;;  %v2329_v59 = vld [vmem:[#allocation7 + $0x70] sm:$0xff] }
 0x3bd   :  { %v744_v6 = vsel %vm741_vm14, %v743_v28, %v739_v61 }
 0x3be   :  { %v757_v12 = vmul.f32 %v1441_v49, %v756_v57  ;;  %v773_v46 = vmul.f32 %v771_v2, %v744_v6 }
 0x3c0   :  { %v758_v13 = vadd.f32 %v1441_v49, %v757_v12  ;;  %v774_v1 = vadd.f32 %v773_v46, %v2068_v38 }
 0x3c2   :  { %v762_v8 = vsel %vm761_vm1, %v1441_v49, %v758_v13  ;;  %1442 = vtanh.f32 %v774_v1 }
 0x3c3   :  { %v767_v36 = vsel %vm764_vm2, %v766_v20, %v762_v8 }
 0x3c4   :  { %v776_v52 = vsub.f32 1.0, %v767_v36  ;;  %v780_v15 = vmul.f32 %v778_v4, %v767_v36 }
 0x3c8   :  { %v1443_v7 = vpop.eup %1442 }
 0x3c9   :  { %v777_v62 = vmul.f32 %v1443_v7, %v776_v52 }
 0x3cb   :  { %v2277_v63 = vadd.f32 %v780_v15, %v777_v62 }
 0x3cd   :  { %v783_v33 = vrot.slane %v2277_v63, 3  ;;  %v2282_v34 = vsel %vm1274_vm3, %v2192_v50, %v2277_v63  ;;  %v2293_v50 = vld [vmem:[#allocation7 + $0x148] sm:$0xff] }
 0x3cf   :  { %801 = vmatmul.f32.vlgmr.msra.gmra.mxu0 %v783_v33  ;;  %821 = vmatmul.f32.vlgmr.msra.gmra.mxu1 %v783_v33 }
 0x3d0   :  { %841 = vmatmul.f32.vlgmr.msra.gmra.mxu2 %v783_v33  ;;  %1069 = vmatpush.msra.mxu0 %v2284_v39 }
 0x3d1   :  { %1151 = vmatpush.msra.mxu1 %v2195_v3  ;;  %1171 = vmatpush.msra.mxu2 %v2198_v14  ;;  %v1509_v3 = vld [vmem:[#allocation7 + $0x128] sm:$0xff]  ;;  %v2301_v14 = vld [vmem:[#allocation7 + $0x118] sm:$0xff] }
 0x3d2   :  { %1070 = vmatpush.msra.mxu0 %v2289_v18 }
 0x3d3   :  { %1152 = vmatpush.msra.mxu1 %v2202_v0  ;;  %1172 = vmatpush.msra.mxu2 %v1505_v40  ;;  %v1511_v0 = vld [vmem:[#allocation7 + $0x110] sm:$0xff] }
 0x3d4   :  { %1071 = vmatpush.msra.mxu0 %v2293_v50 }
 0x3d5   :  { %1153 = vmatpush.msra.mxu1 %v2207_v10  ;;  %1173 = vmatpush.msra.mxu2 %v1507_v43  ;;  %v1513_v10 = vld [vmem:[#allocation7 + $0xf8] sm:$0xff] }
 0x3d6   :  { %1072 = vmatpush.msra.mxu0 %v2297_v44 }
 0x3d7   :  { %1154 = vmatpush.msra.mxu1 %v2212_v22  ;;  %1174 = vmatpush.msra.mxu2 %v1509_v3  ;;  %v1515_v22 = vld [vmem:[#allocation7 + $0xe0] sm:$0xff] }
 0x3d8   :  { %1073 = vmatpush.msra.mxu0 %v2301_v14 }
 0x3d9   :  { %1155 = vmatpush.msra.mxu1 %v2217_v24  ;;  %1175 = vmatpush.msra.mxu2 %v1511_v0  ;;  %v1517_v24 = vld [vmem:[#allocation7 + $0xc8] sm:$0xff] }
 0x3da   :  { %1074 = vmatpush.msra.mxu0 %v2305_v48 }
 0x3db   :  { %1156 = vmatpush.msra.mxu1 %v2222_v16  ;;  %1176 = vmatpush.msra.mxu2 %v1513_v10  ;;  %v1519_v16 = vld [vmem:[#allocation7 + $0xb0] sm:$0xff] }
 0x3dc   :  { %1075 = vmatpush.msra.mxu0 %v2309_v51 }
 0x3dd   :  { %1157 = vmatpush.msra.mxu1 %v2227_v21  ;;  %1177 = vmatpush.msra.mxu2 %v1515_v22  ;;  %v1521_v21 = vld [vmem:[#allocation7 + $0x98] sm:$0xff] }
 0x3de   :  { %1076 = vmatpush.msra.mxu0 %v2313_v54 }
 0x3df   :  { %1158 = vmatpush.msra.mxu1 %v2232_v23  ;;  %1178 = vmatpush.msra.mxu2 %v1517_v24  ;;  %v1523_v23 = vld [vmem:[#allocation7 + $0x80] sm:$0xff] }
 0x3e0   :  { %1077 = vmatpush.msra.mxu0 %v2317_v55 }
 0x3e1   :  { %1159 = vmatpush.msra.mxu1 %v2237_v25  ;;  %1179 = vmatpush.msra.mxu2 %v1519_v16  ;;  %v1525_v25 = vld [vmem:[#allocation7 + $0x68] sm:$0xff] }
 0x3e2   :  { %1078 = vmatpush.msra.mxu0 %v2321_v56 }
 0x3e3   :  { %1160 = vmatpush.msra.mxu1 %v2242_v26  ;;  %1180 = vmatpush.msra.mxu2 %v1521_v21  ;;  %v1527_v26 = vld [vmem:[#allocation7 + $0x50] sm:$0xff] }
 0x3e4   :  { %1079 = vmatpush.msra.mxu0 %v2325_v58 }
 0x3e5   :  { %1161 = vmatpush.msra.mxu1 %v2247_v27  ;;  %1181 = vmatpush.msra.mxu2 %v1523_v23  ;;  %v1529_v27 = vld [vmem:[#allocation7 + $0x38] sm:$0xff] }
 0x3e6   :  { %1080 = vmatpush.msra.mxu0 %v2329_v59 }
 0x3e7   :  { %1162 = vmatpush.msra.mxu1 %v2252_v29  ;;  %1182 = vmatpush.msra.mxu2 %v1525_v25  ;;  %v1531_v29 = vld [vmem:[#allocation7 + $0x18] sm:$0xff] }
 0x3e8   :  { %1081 = vmatpush.msra.mxu0 %v2333_v60 }
 0x3e9   :  { %1163 = vmatpush.msra.mxu1 %v2257_v30  ;;  %1183 = vmatpush.msra.mxu2 %v1527_v26  ;;  %v1534_v30 = vld [vmem:[#allocation7] sm:$0xff] }
 0x3ea   :  { %1082 = vmatpush.msra.mxu0 %v2337_v17 }
 0x3eb   :  { %1164 = vmatpush.msra.mxu1 %v2262_v31  ;;  %1184 = vmatpush.msra.mxu2 %v1529_v27  ;;  %v900_v27 = vrot.slane %v2277_v63, 7 }
 0x3ec   :  { %1083 = vmatpush.msra.mxu0 %v2341_v32 }
 0x3ed   :  { %1165 = vmatpush.msra.mxu1 %v1531_v29  ;;  %1185 = vmatpush.msra.mxu2 %v1532_v35 }
 0x3ee   :  { %1084 = vmatpush.msra.mxu0 %v2344_v37 }
 0x3ef   :  { %1166 = vmatpush.msra.mxu1 %v1534_v30  ;;  %1186 = vmatpush.msra.mxu2 %v1535_v41 }
 0x44c   :  { %v802_v45 = vpop.f32.mrf.mxu0  ;;  %v822_v31 = vpop.f32.mrf.mxu1 }
 0x44d   :  { %v846_v49 = vrot.slane %v802_v45, 4  ;;  %v869_v53 = vrot.slane %v822_v31, 4 }
 0x44f   :  { %v848_v47 = vadd.f32 %v846_v49, %v2480_v11  ;;  %v871_v28 = vadd.f32 %v869_v53, %v2481_v9 }
 0x451   :  { %v1382_v57 = vmul.f32 -1.442695, %v848_v47  ;;  %v1383_v61 = vmul.f32 -1.442695, %v871_v28  ;;  %v2380_v47 = vld [vmem:[%s2420_s6] sm:$0x1] }
 0x453   :  { %1444 = vpow2.f32 %v1382_v57  ;;  %v842_v20 = vpop.f32.mrf.mxu2 }
 0x454   :  { %1446 = vpow2.f32 %v1383_v61  ;;  %v891_v62 = vadd.f32 %v842_v20, %v2482_v5 }
 0x456   :  { %v893_v3 = vrot.slane %v891_v62, 4 }
 0x459   :  { %v1445_v2 = vpop.eup %1444 }
 0x45a   :  { %v1447_v6 = vpop.eup %1446  ;;  %v852_v12 = vadd.f32 1.0, %v1445_v2 }
 0x45b   :  { %v875_v42 = vadd.f32 1.0, %v1447_v6 }
 0x45c   :  { %1448 = vrcp.f32 %v852_v12  ;;  %v864_v52 = vand.u32 2147483648, %v852_v12  ;;  %v862_v7 = vand.u32 2147483647, %v852_v12  ;;  %vm858_vm5 = vweird.f32 %v852_v12 }
 0x45d   :  { %1450 = vrcp.f32 %v875_v42  ;;  %v887_v22 = vand.u32 2147483648, %v875_v42  ;;  %vm881_vm9 = vweird.f32 %v875_v42  ;;  %v885_v16 = vand.u32 2147483647, %v875_v42 }
 0x45e   :  { %v865_v40 = vor.u32 1.1754944e-38, %v864_v52  ;;  %vm863_vm7 = vcmp.eq.f32.partialorder %v862_v7, 8.507059e+37 }
 0x45f   :  { %v888_v5 = vor.u32 1.1754944e-38, %v887_v22  ;;  %vm886_vm11 = vcmp.eq.f32.partialorder %v885_v16, 8.507059e+37 }
 0x462   :  { %v1449_v46 = vpop.eup %1448 }
 0x463   :  { %v1451_v19 = vpop.eup %1450  ;;  %v854_v13 = vmul.f32 %v1449_v46, %v852_v12  ;;  %vm859_vm4 = vweird.f32 %v1449_v46 }
 0x464   :  { %v877_v1 = vmul.f32 %v1451_v19, %v875_v42  ;;  %vm860_vm6 = vmor %vm858_vm5, %vm859_vm4  ;;  %vm882_vm8 = vweird.f32 %v1451_v19  ;;  %vm1278_vm5 = vcmask 1044480  }
 0x465   :  { %v855_v8 = vsub.f32 1.0, %v854_v13  ;;  %vm883_vm10 = vmor %vm881_vm9, %vm882_vm8 }
 0x466   :  { %v878_v36 = vsub.f32 1.0, %v877_v1 }
 0x467   :  { %v856_v4 = vmul.f32 %v1449_v46, %v855_v8 }
 0x468   :  { %v879_v15 = vmul.f32 %v1451_v19, %v878_v36 }
 0x469   :  { %v857_v33 = vadd.f32 %v1449_v46, %v856_v4 }
 0x46a   :  { %v880_v10 = vadd.f32 %v1451_v19, %v879_v15 }
 0x46b   :  { %v861_v43 = vsel %vm860_vm6, %v1449_v46, %v857_v33 }
 0x46c   :  { %v866_v0 = vsel %vm863_vm7, %v865_v40, %v861_v43  ;;  %v884_v23 = vsel %vm883_vm10, %v1451_v19, %v880_v10 }
 0x46d   :  { %v895_v24 = vmul.f32 %v893_v3, %v866_v0  ;;  %v889_v25 = vsel %vm886_vm11, %v888_v5, %v884_v23 }
 0x46e   :  { %v898_v26 = vsub.f32 1.0, %v889_v25  ;;  %v902_v30 = vmul.f32 %v900_v27, %v889_v25 }
 0x46f   :  { %v896_v21 = vadd.f32 %v895_v24, %v2068_v38 }
 0x471   :  { %1452 = vtanh.f32 %v896_v21 }
 0x477   :  { %v1453_v29 = vpop.eup %1452 }
 0x478   :  { %v899_v35 = vmul.f32 %v1453_v29, %v898_v26 }
 0x47a   :  { %v2352_v41 = vadd.f32 %v902_v30, %v899_v35 }
 0x47c   :  { %v905_v45 = vrot.slane %v2352_v41, 4  ;;  %v2357_v31 = vsel %vm1276_vm12, %v2282_v34, %v2352_v41  ;;  %v1022_v15 = vrot.slane %v2352_v41, 7 }
 0x47e   :  { %923 = vmatmul.f32.vlgmr.msra.gmra.mxu3 %v905_v45  ;;  %943 = vmatmul.f32.vlgmr.msrb.gmra.mxu0 %v905_v45 }
 0x47f   :  { %963 = vmatmul.f32.vlgmr.msrb.gmra.mxu1 %v905_v45  ;;  %1191 = vmatpush.msra.mxu3 %v2284_v39 }
 0x481   :  { %1192 = vmatpush.msra.mxu3 %v2289_v18 }
 0x483   :  { %1193 = vmatpush.msra.mxu3 %v2293_v50 }
 0x485   :  { %1194 = vmatpush.msra.mxu3 %v2297_v44 }
 0x487   :  { %1195 = vmatpush.msra.mxu3 %v2301_v14 }
 0x489   :  { %1196 = vmatpush.msra.mxu3 %v2305_v48 }
 0x48b   :  { %1197 = vmatpush.msra.mxu3 %v2309_v51 }
 0x48d   :  { %1198 = vmatpush.msra.mxu3 %v2313_v54 }
 0x48f   :  { %1199 = vmatpush.msra.mxu3 %v2317_v55 }
 0x491   :  { %1200 = vmatpush.msra.mxu3 %v2321_v56 }
 0x493   :  { %1201 = vmatpush.msra.mxu3 %v2325_v58 }
 0x495   :  { %1202 = vmatpush.msra.mxu3 %v2329_v59 }
 0x497   :  { %1203 = vmatpush.msra.mxu3 %v2333_v60 }
 0x499   :  { %1204 = vmatpush.msra.mxu3 %v2337_v17 }
 0x49b   :  { %1205 = vmatpush.msra.mxu3 %v2341_v32 }
 0x49d   :  { %1206 = vmatpush.msra.mxu3 %v2344_v37 }
 0x4fb   :  { %v944_v63 = vpop.f32.mrf.mxu0 }
 0x4fc   :  { %v991_v34 = vrot.slane %v944_v63, 3  ;;  %v964_v37 = vpop.f32.mrf.mxu1 }
 0x4fd   :  { %v1013_v28 = vadd.f32 %v2380_v47, %v964_v37 }
 0x4fe   :  { %v993_v39 = vadd.f32 %v991_v34, %v2481_v9 }
 0x4ff   :  { %v1015_v42 = vrot.slane %v1013_v28, 3 }
 0x500   :  { %v1385_v18 = vmul.f32 -1.442695, %v993_v39 }
 0x501   :  { %v924_v50 = vpop.f32.mrf.mxu3 }
 0x502   :  { %1454 = vpow2.f32 %v1385_v18  ;;  %v968_v44 = vrot.slane %v924_v50, 3 }
 0x504   :  { %v970_v14 = vadd.f32 %v968_v44, %v2480_v11 }
 0x506   :  { %v1384_v48 = vmul.f32 -1.442695, %v970_v14 }
 0x508   :  { %v1455_v51 = vpop.eup %1454  ;;  %1456 = vpow2.f32 %v1384_v48 }
 0x509   :  { %v997_v54 = vadd.f32 1.0, %v1455_v51 }
 0x50b   :  { %1458 = vrcp.f32 %v997_v54  ;;  %v1009_v1 = vand.u32 2147483648, %v997_v54  ;;  %vm1003_vm2 = vweird.f32 %v997_v54  ;;  %v1007_v8 = vand.u32 2147483647, %v997_v54 }
 0x50d   :  { %v1010_v4 = vor.u32 1.1754944e-38, %v1009_v1  ;;  %vm1008_vm4 = vcmp.eq.f32.partialorder %v1007_v8, 8.507059e+37  ;;  %v1299_v1 = vld [vmem:[#allocation8 + $0x78] sm:$0xff]  ;;  %v1297_v8 = vld [vmem:[#allocation8 + $0x68] sm:$0xff] }
 0x50e   :  { %v1457_v55 = vpop.eup %1456  ;;  %1304 = vmatpush.msrb.mxu0 %v1299_v1 }
 0x50f   :  { %v974_v56 = vadd.f32 1.0, %v1457_v55 }
 0x511   :  { %1460 = vrcp.f32 %v974_v56  ;;  %v1459_v58 = vpop.eup %1458  ;;  %v986_v53 = vand.u32 2147483648, %v974_v56  ;;  %v984_v61 = vand.u32 2147483647, %v974_v56  ;;  %vm980_vm14 = vweird.f32 %v974_v56 }
 0x512   :  { %v999_v59 = vmul.f32 %v1459_v58, %v997_v54  ;;  %vm1004_vm1 = vweird.f32 %v1459_v58 }
 0x513   :  { %v987_v12 = vor.u32 1.1754944e-38, %v986_v53  ;;  %vm985_vm0 = vcmp.eq.f32.partialorder %v984_v61, 8.507059e+37  ;;  %vm1005_vm3 = vmor %vm1003_vm2, %vm1004_vm1 }
 0x514   :  { %v1000_v32 = vsub.f32 1.0, %v999_v59 }
 0x516   :  { %v1001_v2 = vmul.f32 %v1459_v58, %v1000_v32 }
 0x517   :  { %v1461_v60 = vpop.eup %1460 }
 0x518   :  { %v976_v17 = vmul.f32 %v1461_v60, %v974_v56  ;;  %vm981_vm13 = vweird.f32 %v1461_v60  ;;  %v1002_v13 = vadd.f32 %v1459_v58, %v1001_v2 }
 0x519   :  { %vm982_vm15 = vmor %vm980_vm14, %vm981_vm13  ;;  %vm1280_vm14 = vcmask 1045504  }
 0x51a   :  { %v977_v49 = vsub.f32 1.0, %v976_v17  ;;  %v1006_v52 = vsel %vm1005_vm3, %v1459_v58, %v1002_v13 }
 0x51b   :  { %v1011_v7 = vsel %vm1008_vm4, %v1010_v4, %v1006_v52  ;;  %v1295_v52 = vld [vmem:[#allocation8 + $0x58] sm:$0xff]  ;;  %v1294_v4 = vld [vmem:[#allocation8 + $0x50] sm:$0xff] }
 0x51c   :  { %v978_v57 = vmul.f32 %v1461_v60, %v977_v49  ;;  %v1020_v62 = vsub.f32 1.0, %v1011_v7  ;;  %v1024_v43 = vmul.f32 %v1022_v15, %v1011_v7  ;;  %v1293_v7 = vld [vmem:[#allocation8 + $0x48] sm:$0xff]  ;;  %v1292_v15 = vld [vmem:[#allocation8 + $0x40] sm:$0xff] }
 0x51e   :  { %v979_v6 = vadd.f32 %v1461_v60, %v978_v57 }
 0x520   :  { %v983_v46 = vsel %vm982_vm15, %v1461_v60, %v979_v6 }
 0x521   :  { %v988_v19 = vsel %vm985_vm0, %v987_v12, %v983_v46 }
 0x522   :  { %v1017_v20 = vmul.f32 %v1015_v42, %v988_v19 }
 0x524   :  { %v1018_v36 = vadd.f32 %v1017_v20, %v2068_v38  ;;  %v1298_v20 = vld [vmem:[#allocation8 + $0x70] sm:$0xff] }
 0x525   :  { %1305 = vmatpush.msrb.mxu0 %v1298_v20 }
 0x526   :  { %1462 = vtanh.f32 %v1018_v36  ;;  %v1296_v36 = vld [vmem:[#allocation8 + $0x60] sm:$0xff] }
 0x527   :  { %1306 = vmatpush.msrb.mxu0 %v1297_v8 }
 0x529   :  { %1307 = vmatpush.msrb.mxu0 %v1296_v36 }
 0x52b   :  { %1308 = vmatpush.msrb.mxu0 %v1295_v52 }
 0x52c   :  { %v1463_v33 = vpop.eup %1462 }
 0x52d   :  { %v1021_v40 = vmul.f32 %v1463_v33, %v1020_v62  ;;  %1309 = vmatpush.msrb.mxu0 %v1294_v4 }
 0x52f   :  { %v1025_v3 = vadd.f32 %v1024_v43, %v1021_v40  ;;  %1310 = vmatpush.msrb.mxu0 %v1293_v7  ;;  %v1291_v40 = vld [vmem:[#allocation8 + $0x38] sm:$0xff] }
 0x531   :  { %v1027_v0 = vrot.slane %v1025_v3, 5  ;;  %v2386_v10 = vsel %vm1278_vm5, %v2357_v31, %v1025_v3  ;;  %v1144_v2 = vrot.slane %v1025_v3, 7  ;;  %1311 = vmatpush.msrb.mxu0 %v1292_v15  ;;  %v1290_v3 = vld [vmem:[#allocation8 + $0x30] sm:$0xff] }
 0x533   :  { %1045 = vmatmul.f32.vlgmr.msrb.gmra.mxu2 %v1027_v0  ;;  %1065 = vmatmul.f32.vlgmr.msrb.gmra.mxu3 %v1027_v0 }
 0x534   :  { %1085 = vmatmul.f32.vlgmr.msra.gmra.mxu0 %v1027_v0 }
 0x535   :  { %1312 = vmatpush.msrb.mxu0 %v1291_v40 }
 0x537   :  { %1313 = vmatpush.msrb.mxu0 %v1290_v3 }
 0x5b1   :  { %v1086_v63 = vpop.f32.mrf.mxu0 }
 0x5b2   :  { %v1135_v44 = vadd.f32 %v2380_v47, %v1086_v63 }
 0x5b4   :  { %v1137_v56 = vrot.slane %v1135_v44, 2 }
 0x5b6   :  { %v1046_v22 = vpop.f32.mrf.mxu2  ;;  %v1066_v24 = vpop.f32.mrf.mxu3 }
 0x5b7   :  { %v1090_v16 = vrot.slane %v1046_v22, 2  ;;  %v1113_v21 = vrot.slane %v1066_v24, 2  ;;  %v1288_v24 = vld [vmem:[#allocation8 + $0x20] sm:$0xff] }
 0x5b9   :  { %v1092_v23 = vadd.f32 %v1090_v16, %v2480_v11  ;;  %v1115_v5 = vadd.f32 %v1113_v21, %v2481_v9  ;;  %v1287_v21 = vld [vmem:[#allocation8 + $0x18] sm:$0xff] }
 0x5bb   :  { %v1386_v25 = vmul.f32 -1.442695, %v1092_v23  ;;  %v1387_v26 = vmul.f32 -1.442695, %v1115_v5  ;;  %v1286_v5 = vld [vmem:[#allocation8 + $0x10] sm:$0xff] }
 0x5bd   :  { %1464 = vpow2.f32 %v1386_v25 }
 0x5be   :  { %1466 = vpow2.f32 %v1387_v26  ;;  %v1285_v26 = vld [vmem:[#allocation8 + $0x8] sm:$0xff] }
 0x5c3   :  { %v1465_v27 = vpop.eup %1464 }
 0x5c4   :  { %v1467_v29 = vpop.eup %1466  ;;  %v1096_v35 = vadd.f32 1.0, %v1465_v27 }
 0x5c5   :  { %v1119_v30 = vadd.f32 1.0, %v1467_v29  ;;  %v1284_v29 = vld [vmem:[#allocation8] sm:$0xff] }
 0x5c6   :  { %1468 = vrcp.f32 %v1096_v35  ;;  %v1108_v18 = vand.u32 2147483648, %v1096_v35  ;;  %v1106_v48 = vand.u32 2147483647, %v1096_v35  ;;  %vm1102_vm7 = vweird.f32 %v1096_v35 }
 0x5c7   :  { %1470 = vrcp.f32 %v1119_v30  ;;  %v1131_v32 = vand.u32 2147483648, %v1119_v30  ;;  %vm1125_vm11 = vweird.f32 %v1119_v30  ;;  %v1129_v37 = vand.u32 2147483647, %v1119_v30 }
 0x5c8   :  { %v1109_v55 = vor.u32 1.1754944e-38, %v1108_v18  ;;  %vm1107_vm9 = vcmp.eq.f32.partialorder %v1106_v48, 8.507059e+37 }
 0x5c9   :  { %v1132_v28 = vor.u32 1.1754944e-38, %v1131_v32  ;;  %vm1130_vm13 = vcmp.eq.f32.partialorder %v1129_v37, 8.507059e+37 }
 0x5cc   :  { %v1469_v41 = vpop.eup %1468 }
 0x5cd   :  { %v1471_v45 = vpop.eup %1470  ;;  %v1098_v31 = vmul.f32 %v1469_v41, %v1096_v35  ;;  %vm1103_vm6 = vweird.f32 %v1469_v41 }
 0x5ce   :  { %v1121_v34 = vmul.f32 %v1471_v45, %v1119_v30  ;;  %vm1104_vm8 = vmor %vm1102_vm7, %vm1103_vm6  ;;  %vm1126_vm10 = vweird.f32 %v1471_v45  ;;  %vm1282_vm7 = vcmask 1046528  }
 0x5cf   :  { %v1099_v39 = vsub.f32 1.0, %v1098_v31  ;;  %vm1127_vm12 = vmor %vm1125_vm11, %vm1126_vm10 }
 0x5d0   :  { %v1122_v50 = vsub.f32 1.0, %v1121_v34 }
 0x5d1   :  { %v1100_v14 = vmul.f32 %v1469_v41, %v1099_v39 }
 0x5d2   :  { %v1123_v51 = vmul.f32 %v1471_v45, %v1122_v50 }
 0x5d3   :  { %v1101_v54 = vadd.f32 %v1469_v41, %v1100_v14 }
 0x5d4   :  { %v1124_v60 = vadd.f32 %v1471_v45, %v1123_v51 }
 0x5d5   :  { %v1105_v58 = vsel %vm1104_vm8, %v1469_v41, %v1101_v54 }
 0x5d6   :  { %v1110_v59 = vsel %vm1107_vm9, %v1109_v55, %v1105_v58  ;;  %v1128_v53 = vsel %vm1127_vm12, %v1471_v45, %v1124_v60 }
 0x5d7   :  { %v1139_v17 = vmul.f32 %v1137_v56, %v1110_v59  ;;  %v1133_v57 = vsel %vm1130_vm13, %v1132_v28, %v1128_v53 }
 0x5d8   :  { %v1142_v61 = vsub.f32 1.0, %v1133_v57  ;;  %v1146_v42 = vmul.f32 %v1144_v2, %v1133_v57 }
 0x5d9   :  { %v1140_v49 = vadd.f32 %v1139_v17, %v2068_v38 }
 0x5db   :  { %1472 = vtanh.f32 %v1140_v49 }
 0x5e1   :  { %v1473_v6 = vpop.eup %1472 }
 0x5e2   :  { %v1143_v12 = vmul.f32 %v1473_v6, %v1142_v61 }
 0x5e4   :  { %v2392_v46 = vadd.f32 %v1146_v42, %v1143_v12 }
 0x5e6   :  { %v1149_v19 = vrot.slane %v2392_v46, 6  ;;  %v2397_v13 = vsel %vm1280_vm14, %v2386_v10, %v2392_v46  ;;  %v1289_v10 = vld [vmem:[#allocation8 + $0x28] sm:$0xff]  ;;  %v1266_v57 = vrot.slane %v2392_v46, 7 }
 0x5e7   :  { %1314 = vmatpush.msrb.mxu0 %v1289_v10 }
 0x5e8   :  { %1167 = vmatmul.f32.vlgmr.msra.gmra.mxu1 %v1149_v19  ;;  %1187 = vmatmul.f32.vlgmr.msra.gmra.mxu2 %v1149_v19 }
 0x5e9   :  { %1207 = vmatmul.f32.vlgmr.msra.gmra.mxu3 %v1149_v19  ;;  %1315 = vmatpush.msrb.mxu0 %v1288_v24 }
 0x5eb   :  { %1316 = vmatpush.msrb.mxu0 %v1287_v21 }
 0x5ed   :  { %1317 = vmatpush.msrb.mxu0 %v1286_v5 }
 0x5ef   :  { %1318 = vmatpush.msrb.mxu0 %v1285_v26 }
 0x5f1   :  { %1319 = vmatpush.msrb.mxu0 %v1284_v29 }
 0x665   :  { %v1168_v62 = vpop.f32.mrf.mxu1 }
 0x666   :  { %v1212_v33 = vrot.slane %v1168_v62, 1 }
 0x668   :  { %v1214_v43 = vadd.f32 %v1212_v33, %v2480_v11 }
 0x66a   :  { %v1388_v0 = vmul.f32 -1.442695, %v1214_v43 }
 0x66b   :  { %v1188_v22 = vpop.f32.mrf.mxu2 }
 0x66c   :  { %1474 = vpow2.f32 %v1388_v0  ;;  %v1235_v16 = vrot.slane %v1188_v22, 1  ;;  %v1208_v31 = vpop.f32.mrf.mxu3 }
 0x66d   :  { %v1257_v18 = vadd.f32 %v2380_v47, %v1208_v31 }
 0x66e   :  { %v1237_v23 = vadd.f32 %v1235_v16, %v2481_v9 }
 0x66f   :  { %v1259_v55 = vrot.slane %v1257_v18, 1 }
 0x670   :  { %v1389_v25 = vmul.f32 -1.442695, %v1237_v23 }
 0x672   :  { %v1475_v27 = vpop.eup %1474  ;;  %1476 = vpow2.f32 %v1389_v25 }
 0x673   :  { %v1218_v11 = vadd.f32 1.0, %v1475_v27 }
 0x675   :  { %1478 = vrcp.f32 %v1218_v11  ;;  %v1230_v63 = vand.u32 2147483648, %v1218_v11  ;;  %v1228_v39 = vand.u32 2147483647, %v1218_v11  ;;  %vm1224_vm0 = vweird.f32 %v1218_v11 }
 0x677   :  { %v1231_v48 = vor.u32 1.1754944e-38, %v1230_v63  ;;  %vm1229_vm2 = vcmp.eq.f32.partialorder %v1228_v39, 8.507059e+37 }
 0x678   :  { %v1477_v35 = vpop.eup %1476 }
 0x679   :  { %v1241_v30 = vadd.f32 1.0, %v1477_v35 }
 0x67b   :  { %v1479_v41 = vpop.eup %1478  ;;  %1480 = vrcp.f32 %v1241_v30  ;;  %v1253_v60 = vand.u32 2147483648, %v1241_v30  ;;  %v1251_v17 = vand.u32 2147483647, %v1241_v30  ;;  %vm1247_vm4 = vweird.f32 %v1241_v30 }
 0x67c   :  { %v1220_v45 = vmul.f32 %v1479_v41, %v1218_v11  ;;  %vm1225_vm15 = vweird.f32 %v1479_v41 }
 0x67d   :  { %vm1226_vm1 = vmor %vm1224_vm0, %vm1225_vm15  ;;  %v1254_v49 = vor.u32 1.1754944e-38, %v1253_v60  ;;  %vm1252_vm6 = vcmp.eq.f32.partialorder %v1251_v17, 8.507059e+37 }
 0x67e   :  { %v1221_v9 = vsub.f32 1.0, %v1220_v45 }
 0x680   :  { %v1222_v34 = vmul.f32 %v1479_v41, %v1221_v9 }
 0x681   :  { %v1481_v50 = vpop.eup %1480 }
 0x682   :  { %v1243_v44 = vmul.f32 %v1481_v50, %v1241_v30  ;;  %v1223_v14 = vadd.f32 %v1479_v41, %v1222_v34  ;;  %vm1248_vm3 = vweird.f32 %v1481_v50 }
 0x683   :  { %vm1249_vm5 = vmor %vm1247_vm4, %vm1248_vm3 }
 0x684   :  { %v1244_v51 = vsub.f32 1.0, %v1243_v44  ;;  %v1227_v54 = vsel %vm1226_vm1, %v1479_v41, %v1223_v14 }
 0x685   :  { %v1232_v56 = vsel %vm1229_vm2, %v1231_v48, %v1227_v54 }
 0x686   :  { %v1245_v58 = vmul.f32 %v1481_v50, %v1244_v51  ;;  %v1261_v59 = vmul.f32 %v1259_v55, %v1232_v56 }
 0x688   :  { %v1262_v32 = vadd.f32 %v1261_v59, %v2068_v38  ;;  %v1246_v37 = vadd.f32 %v1481_v50, %v1245_v58  ;;  %v1403_v38 = vld [vmem:[%s2422_s8] ss:$0 sm:$0xff]  ;;  %s1702_s8 = smov [#allocation10]  }
 0x689   :  { %s1342_s26 = sshll.u32 %s1702_s8, 4  ;;  %s1343_s26 = int_to_ptr.vmem [resolvable:$true] %s1342_s26 }
 0x68a   :  { %1482 = vtanh.f32 %v1262_v32  ;;  %v1250_v47 = vsel %vm1249_vm5, %v1481_v50, %v1246_v37 }
 0x68b   :  { %v1255_v53 = vsel %vm1252_vm6, %v1254_v49, %v1250_v47 }
 0x68c   :  { %v1264_v28 = vsub.f32 1.0, %v1255_v53  ;;  %v1268_v6 = vmul.f32 %v1266_v57, %v1255_v53 }
 0x690   :  { %v1483_v61 = vpop.eup %1482 }
 0x691   :  { %v1265_v2 = vmul.f32 %v1483_v61, %v1264_v28 }
 0x693   :  { %v1269_v12 = vadd.f32 %v1268_v6, %v1265_v2 }
 0x695   :  { %v1283_v42 = vsel %vm1282_vm7, %v2397_v13, %v1269_v12  ;;  %1336 = vst [vmem:[#allocation11 - $0x7] sm:$0x80] %v1269_v12 }
 0x696   :  { %1320 = vmatmul.f32.vlgmr.msrb.gmra.mxu0 %v1283_v42  ;;  %1358 = dma.vmem_to_hbm [thread:$0]  %s1354_s22, 16, %s1356_s25, [#allocation12]  }
 0x713   :  { %v1321_v19 = vpop.f32.mrf.mxu0 }
 0x714   :  { %v1322_v1 = vadd.f32 %v1403_v38, %v1321_v19 }
 0x716   :  { %1324 = vmax.xlane.f32.xlu0 %v1322_v1 }
 0x789   :  { %v1325_v20 = vpop.xlane.xlu0 %1324 }
 0x78a   :  { %v1326_v8 = vsub.f32 %v1322_v1, %v1325_v20 }
 0x78c   :  { %v1327_v36 = vmul.f32 1.442695, %v1326_v8 }
 0x78e   :  { %1484 = vpow2.f32 %v1327_v36 }
 0x794   :  { %v1485_v46 = vpop.eup %1484 }
 0x795   :  { %1329 = vadd.xlane.f32.xlu1 %v1485_v46 }
 0x808   :  { %v1330_v13 = vpop.xlane.xlu1 %1329 }
 0x809   :  { %1486 = vlog2.f32 %v1330_v13 }
 0x80f   :  { %v1487_v52 = vpop.eup %1486 }
 0x810   :  { %v1332_v4 = vmul.f32 0.6931472, %v1487_v52 }
 0x812   :  { %v1333_v7 = vadd.f32 %v1332_v4, %v1325_v20 }
 0x814   :  { %v1334_v62 = vsub.f32 %v1322_v1, %v1333_v7 }
 0x816   :  { %1335 = vst [vmem:[#allocation10] sm:$0xff] %v1334_v62 }
 0x817   :  { %1347 = dma.vmem_to_hbm [thread:$0]  %s1343_s26, 128, %s1345_s28, [#allocation4]  }
 0x818   :  { %1687 = dma.done.wait [#allocation4], 128  }
 0x819   :  { %1688 = vsyncadd [#allocation4], 4294967168 }
 0x81a   :  { %1689 = dma.done.wait [#allocation12], 16  }
 0x81b   :  { %1690 = vsyncadd [#allocation12], 4294967280 }
 0x81c   :  { %1367 = vsyncpa [#allocation3], 1 }
 0x81d   :  { %1368 = vsyncpa [#allocation6], 1 }
 0x81e   :  { %1369 = vsyncpa [#allocation9], 1 }
 0x81f   :  { %1370 = vsyncpa [#allocation4], 1 }
 0x820   :  { %1371 = vsyncpa [#allocation12], 1 }

</bundles_post_ra>
